<compile_context>
chip_gen: v7x
topology: tpu7x:2x2x1
jax: 0.10.0
libtpu: 0.0.40
codegen_flags: <defaults>
</compile_context>

<pallas_src>
import functools

import jax
import jax.numpy as jnp
from jax import lax
from jax.experimental import pallas as pl
from jax.experimental.pallas import tpu as pltpu

LN_EPS = 1e-5   # PyTorch nn.LayerNorm default
SUBLANE = 8     # f32 sublane count; batch is padded to a multiple of this


# ----------------------------- Pallas kernel -------------------------------

def _fused_gru_update(gi, gh, h, b_hn, H):
    """One GRU update from pre-projected gate inputs (torch gate order r,z,n).

    gi:   x @ W_ih_cat + (b_ih + [b_hh_r, b_hh_z, 0])   [B, 3H]
    gh:   h @ W_hh_cat  (no bias)                       [B, 3H]
    b_hn: b_hh_n                                        [1, H]
    """
    rz = jax.nn.sigmoid(gi[:, :2 * H] + gh[:, :2 * H])      # r and z in one EUP pass
    r = rz[:, :H]
    z = rz[:, H:]
    n = jnp.tanh(gi[:, 2 * H:] + r * (gh[:, 2 * H:] + b_hn))
    return n + z * (h - n)                                   # == (1 - z) * n + z * h


def gru_proj_kernel(x_ref, mask_ref,
                    w_ih0_ref, w_hh0_ref, b0_ref, bh0n_ref,
                    w_ih1_ref, w_hh1_ref, b1_ref, bh1n_ref,
                    w_fc_ref, b_fc_ref, gamma_ref, beta_ref,
                    out_ref, *, T, B):
    H = w_hh0_ref.shape[0]

    # Hoisted layer-0 input projection for ALL timesteps: one big MXU matmul.
    # x_ref is [T*B, D] (time-major, batch padded to full sublanes).
    # TODO(synk): on v6e/v7x the matmul operands could be cast to bf16 (f32 acc)
    # for more MXU throughput; kept f32 here for bit-tight parity with the ref.
    gi0_all = jnp.dot(x_ref[...], w_ih0_ref[...],
                      preferred_element_type=jnp.float32) + b0_ref[...]   # [T*B, 3H]

    w_hh0 = w_hh0_ref[...]
    bh0n = bh0n_ref[...]
    w_ih1 = w_ih1_ref[...]
    w_hh1 = w_hh1_ref[...]
    b1 = b1_ref[...]
    bh1n = bh1n_ref[...]
    mask = mask_ref[...]                                                  # [T*B, 1] f32

    h0 = jnp.zeros((B, H), jnp.float32)
    h1 = jnp.zeros((B, H), jnp.float32)

    # Fully-unrolled recurrence (T small & static => static, sublane-aligned
    # slices of gi0_all / mask; flat trace gives the scheduler cross-step
    # visibility so the two layers' matmul/EUP/VPU work interleaves).
    # TODO(synk): for large production T, switch to a grid over T-chunks with a
    # BlockSpec on x (h0/h1 in VMEM scratch) so the input stream is
    # double-buffered instead of held resident (required for v7x 64 MiB VMEM).
    for t in range(T):
        m = mask[t * B:(t + 1) * B, :]                                    # [B, 1]

        # ---- layer 0 ----
        gi0 = gi0_all[t * B:(t + 1) * B, :]                               # [B, 3H]
        gh0 = jnp.dot(h0, w_hh0, preferred_element_type=jnp.float32)
        h0_new = _fused_gru_update(gi0, gh0, h0, bh0n, H)
        h0 = h0 + m * (h0_new - h0)   # pack_padded_sequence: freeze at t >= length

        # ---- layer 1 ----
        gi1 = jnp.dot(h0, w_ih1, preferred_element_type=jnp.float32) + b1
        gh1 = jnp.dot(h1, w_hh1, preferred_element_type=jnp.float32)
        h1_new = _fused_gru_update(gi1, gh1, h1, bh1n, H)
        h1 = h1 + m * (h1_new - h1)

    # non_seq_layers: Linear -> Dropout (identity, eval) -> LayerNorm
    proj = jnp.dot(h1, w_fc_ref[...],
                   preferred_element_type=jnp.float32) + b_fc_ref[...]    # [B, E]
    mean = jnp.mean(proj, axis=-1, keepdims=True)
    var = jnp.mean((proj - mean) ** 2, axis=-1, keepdims=True)
    normed = (proj - mean) * lax.rsqrt(var + LN_EPS)
    out_ref[...] = normed * gamma_ref[...] + beta_ref[...]


# ------------------------------- Wrapper ------------------------------------

def sequential_audio_model(features, lengths, params):
    """features: [B, T, D] float32 (batch_first, as in PyTorch); lengths: [B] int32."""
    B, T, D = features.shape
    H = params["w_hh0"].shape[-1]
    E = params["w_fc"].shape[-1]

    B_pad = ((B + SUBLANE - 1) // SUBLANE) * SUBLANE

    # Time-major, batch padded to full f32 sublanes, flattened to [T*B_pad, D]
    # so the hoisted layer-0 projection is a single 2-D MXU matmul.
    x = jnp.transpose(features.astype(jnp.float32), (1, 0, 2))            # [T, B, D]
    x = jnp.pad(x, ((0, 0), (0, B_pad - B), (0, 0)))                      # [T, B_pad, D]
    x_flat = x.reshape(T * B_pad, D)

    # Validity mask precomputed once (padded rows get length 0 => stay at h=0).
    lengths_p = jnp.pad(lengths.astype(jnp.int32), (0, B_pad - B))
    mask = (jnp.arange(T, dtype=jnp.int32)[:, None] < lengths_p[None, :])
    mask = mask.astype(jnp.float32).reshape(T * B_pad, 1)                 # [T*B_pad, 1]

    # Gate-fused weight layout (lanes = r|z|n) + r/z bias folding, done once here.
    def cat3(w):  # [3, Din, H] -> [Din, 3H]
        return jnp.concatenate([w[0], w[1], w[2]], axis=-1)

    w_ih0 = cat3(params["w_ih0"]); w_hh0 = cat3(params["w_hh0"])
    w_ih1 = cat3(params["w_ih1"]); w_hh1 = cat3(params["w_hh1"])
    b0 = jnp.concatenate([params["b_ih0"][0] + params["b_hh0"][0],
                          params["b_ih0"][1] + params["b_hh0"][1],
                          params["b_ih0"][2]], axis=-1)                   # [1, 3H]
    b1 = jnp.concatenate([params["b_ih1"][0] + params["b_hh1"][0],
                          params["b_ih1"][1] + params["b_hh1"][1],
                          params["b_ih1"][2]], axis=-1)                   # [1, 3H]
    bh0n = params["b_hh0"][2]                                             # [1, H]
    bh1n = params["b_hh1"][2]                                             # [1, H]

    args = (x_flat, mask,
            w_ih0, w_hh0, b0, bh0n,
            w_ih1, w_hh1, b1, bh1n,
            params["w_fc"], params["b_fc"], params["gamma"], params["beta"])

    vmem = pl.BlockSpec(memory_space=pltpu.MemorySpace.VMEM)
    out = pl.pallas_call(
        functools.partial(gru_proj_kernel, T=T, B=B_pad),
        out_shape=jax.ShapeDtypeStruct((B_pad, E), jnp.float32),
        in_specs=[vmem] * len(args),
        out_specs=vmem,
    )(*args)
    return out[:B]


# ----------------------- Pure-JAX reference & params ------------------------

def _gru_cell(x_t, h, w_ih, w_hh, b_ih, b_hh):
    """PyTorch GRU cell (gate order r, z, n). w_ih: [3, Din, H], w_hh: [3, H, H]."""
    gi_r = x_t @ w_ih[0] + b_ih[0]
    gi_z = x_t @ w_ih[1] + b_ih[1]
    gi_n = x_t @ w_ih[2] + b_ih[2]
    gh_r = h @ w_hh[0] + b_hh[0]
    gh_z = h @ w_hh[1] + b_hh[1]
    gh_n = h @ w_hh[2] + b_hh[2]
    r = jax.nn.sigmoid(gi_r + gh_r)
    z = jax.nn.sigmoid(gi_z + gh_z)
    n = jnp.tanh(gi_n + r * gh_n)
    return (1.0 - z) * n + z * h


def reference(features, lengths, params):
    """Pure-JAX reference with identical semantics (for verification)."""
    B, T, D = features.shape
    H = params["w_hh0"].shape[-1]
    h0 = jnp.zeros((B, H), jnp.float32)
    h1 = jnp.zeros((B, H), jnp.float32)
    len2d = lengths.reshape(B, 1)
    for t in range(T):
        x_t = features[:, t, :]
        valid = len2d > t
        h0 = jnp.where(valid, _gru_cell(x_t, h0, params["w_ih0"], params["w_hh0"],
                                        params["b_ih0"], params["b_hh0"]), h0)
        h1 = jnp.where(valid, _gru_cell(h0, h1, params["w_ih1"], params["w_hh1"],
                                        params["b_ih1"], params["b_hh1"]), h1)
    proj = h1 @ params["w_fc"] + params["b_fc"]
    mean = jnp.mean(proj, axis=-1, keepdims=True)
    var = jnp.mean((proj - mean) ** 2, axis=-1, keepdims=True)
    return (proj - mean) / jnp.sqrt(var + LN_EPS) * params["gamma"] + params["beta"]


def init_params(key, D, H, E):
    """Deterministic init. GRU params ~ U(-1/sqrt(H), 1/sqrt(H)) as in PyTorch."""
    ks = jax.random.split(key, 12)
    bound = 1.0 / jnp.sqrt(H)
    u = lambda k, shape: jax.random.uniform(k, shape, jnp.float32, -bound, bound)
    return {
        # layer 0 (input size D), layer 1 (input size H); gates stacked as [r, z, n]
        "w_ih0": u(ks[0], (3, D, H)), "w_hh0": u(ks[1], (3, H, H)),
        "b_ih0": u(ks[2], (3, 1, H)), "b_hh0": u(ks[3], (3, 1, H)),
        "w_ih1": u(ks[4], (3, H, H)), "w_hh1": u(ks[5], (3, H, H)),
        "b_ih1": u(ks[6], (3, 1, H)), "b_hh1": u(ks[7], (3, 1, H)),
        # Linear(H, E)
        "w_fc": jax.random.uniform(ks[8], (H, E), jnp.float32,
                                   -1.0 / jnp.sqrt(H), 1.0 / jnp.sqrt(H)),
        "b_fc": jax.random.uniform(ks[9], (1, E), jnp.float32,
                                   -1.0 / jnp.sqrt(H), 1.0 / jnp.sqrt(H)),
        # LayerNorm(E)
        "gamma": jnp.ones((1, E), jnp.float32),
        "beta": jnp.zeros((1, E), jnp.float32),
    }


if __name__ == "__main__":
    # CFG: audio_encoder_input=16, audio_hidden_dim=32, audio_layer_dim=2,
    #      mutual_embedding_dim=32, audio_proj_head='gru', bidirectional=False,
    #      eval mode (dropout = identity).
    B, T, D, H, E = 2, 8, 16, 32, 32

    key = jax.random.PRNGKey(0)
    k_feat, k_par = jax.random.split(key)
    features = jax.random.normal(k_feat, (B, T, D), jnp.float32)
    lengths = jnp.array([8, 5], dtype=jnp.int32)
    params = init_params(k_par, D, H, E)

    out = sequential_audio_model(features, lengths, params)
    out = jax.block_until_ready(out)

    ref = reference(features, lengths, params)
    assert out.shape == (B, E)
    assert jnp.allclose(out, ref, atol=2e-3, rtol=2e-3), "mismatch vs pure-JAX reference"

    # TODO(synk): dropout layers are identity here (eval mode); training-mode dropout
    # would need pltpu.prng_* inside the kernel.
    print("KERNEL_OK")
</pallas_src>

<mosaic_0001>
module attributes {stable_mosaic.version = 11 : i64} {
  func.func @gru_proj_kernel(%arg0: memref<64x16xf32, #tpu.memory_space<vmem>>, %arg1: memref<64x1xf32, #tpu.memory_space<vmem>>, %arg2: memref<16x96xf32, #tpu.memory_space<vmem>>, %arg3: memref<32x96xf32, #tpu.memory_space<vmem>>, %arg4: memref<1x96xf32, #tpu.memory_space<vmem>>, %arg5: memref<1x32xf32, #tpu.memory_space<vmem>>, %arg6: memref<32x96xf32, #tpu.memory_space<vmem>>, %arg7: memref<32x96xf32, #tpu.memory_space<vmem>>, %arg8: memref<1x96xf32, #tpu.memory_space<vmem>>, %arg9: memref<1x32xf32, #tpu.memory_space<vmem>>, %arg10: memref<32x32xf32, #tpu.memory_space<vmem>>, %arg11: memref<1x32xf32, #tpu.memory_space<vmem>>, %arg12: memref<1x32xf32, #tpu.memory_space<vmem>>, %arg13: memref<1x32xf32, #tpu.memory_space<vmem>>, %arg14: memref<8x32xf32, #tpu.memory_space<vmem>>) attributes {dimension_semantics = [], scalar_prefetch = 0 : i64, scratch_operands = 0 : i64, tpu.core_type = #tpu.core_type<tc>} {
    %c0 = arith.constant 0 : index
    %c0_0 = arith.constant 0 : index
    %0 = vector.load %arg0[%c0, %c0_0] : memref<64x16xf32, #tpu.memory_space<vmem>>, vector<64x16xf32>
    %c0_1 = arith.constant 0 : index
    %c0_2 = arith.constant 0 : index
    %1 = vector.load %arg2[%c0_1, %c0_2] : memref<16x96xf32, #tpu.memory_space<vmem>>, vector<16x96xf32>
    %cst = arith.constant dense<0.000000e+00> : vector<64x96xf32>
    %2 = tpu.matmul %0, %1, %cst {dimension_numbers = #tpu.dot_dimension_numbers<[1], [0], [0], [1], [0, 0, 1, 1], [], []>} : vector<64x16xf32>, vector<16x96xf32>, vector<64x96xf32> -> vector<64x96xf32>
    %c0_3 = arith.constant 0 : index
    %c0_4 = arith.constant 0 : index
    %3 = vector.load %arg4[%c0_3, %c0_4] : memref<1x96xf32, #tpu.memory_space<vmem>>, vector<1x96xf32>
    %4 = vector.broadcast %3 : vector<1x96xf32> to vector<64x96xf32>
    %5 = arith.addf %2, %4 : vector<64x96xf32>
    %c0_5 = arith.constant 0 : index
    %c0_6 = arith.constant 0 : index
    %6 = vector.load %arg3[%c0_5, %c0_6] : memref<32x96xf32, #tpu.memory_space<vmem>>, vector<32x96xf32>
    %c0_7 = arith.constant 0 : index
    %c0_8 = arith.constant 0 : index
    %7 = vector.load %arg5[%c0_7, %c0_8] : memref<1x32xf32, #tpu.memory_space<vmem>>, vector<1x32xf32>
    %c0_9 = arith.constant 0 : index
    %c0_10 = arith.constant 0 : index
    %8 = vector.load %arg6[%c0_9, %c0_10] : memref<32x96xf32, #tpu.memory_space<vmem>>, vector<32x96xf32>
    %c0_11 = arith.constant 0 : index
    %c0_12 = arith.constant 0 : index
    %9 = vector.load %arg7[%c0_11, %c0_12] : memref<32x96xf32, #tpu.memory_space<vmem>>, vector<32x96xf32>
    %c0_13 = arith.constant 0 : index
    %c0_14 = arith.constant 0 : index
    %10 = vector.load %arg8[%c0_13, %c0_14] : memref<1x96xf32, #tpu.memory_space<vmem>>, vector<1x96xf32>
    %c0_15 = arith.constant 0 : index
    %c0_16 = arith.constant 0 : index
    %11 = vector.load %arg9[%c0_15, %c0_16] : memref<1x32xf32, #tpu.memory_space<vmem>>, vector<1x32xf32>
    %c0_17 = arith.constant 0 : index
    %c0_18 = arith.constant 0 : index
    %12 = vector.load %arg1[%c0_17, %c0_18] : memref<64x1xf32, #tpu.memory_space<vmem>>, vector<64x1xf32>
    %cst_19 = arith.constant 0.000000e+00 : f32
    %13 = vector.broadcast %cst_19 : f32 to vector<8x32xf32>
    %cst_20 = arith.constant 0.000000e+00 : f32
    %14 = vector.broadcast %cst_20 : f32 to vector<8x32xf32>
    %15 = vector.extract_strided_slice %12 {offsets = [0, 0], sizes = [8, 1], strides = [1, 1]} : vector<64x1xf32> to vector<8x1xf32>
    %16 = vector.extract_strided_slice %5 {offsets = [0, 0], sizes = [8, 96], strides = [1, 1]} : vector<64x96xf32> to vector<8x96xf32>
    %cst_21 = arith.constant dense<0.000000e+00> : vector<8x96xf32>
    %17 = tpu.matmul %13, %6, %cst_21 {dimension_numbers = #tpu.dot_dimension_numbers<[1], [0], [0], [1], [0, 0, 1, 1], [], []>} : vector<8x32xf32>, vector<32x96xf32>, vector<8x96xf32> -> vector<8x96xf32>
    %18 = vector.extract_strided_slice %16 {offsets = [0, 0], sizes = [8, 64], strides = [1, 1]} : vector<8x96xf32> to vector<8x64xf32>
    %19 = vector.extract_strided_slice %17 {offsets = [0, 0], sizes = [8, 64], strides = [1, 1]} : vector<8x96xf32> to vector<8x64xf32>
    %20 = arith.addf %18, %19 : vector<8x64xf32>
    %21 = arith.negf %20 : vector<8x64xf32>
    %22 = math.exp %21 : vector<8x64xf32>
    %cst_22 = arith.constant 1.000000e+00 : f32
    %23 = vector.broadcast %cst_22 : f32 to vector<8x64xf32>
    %24 = arith.addf %23, %22 : vector<8x64xf32>
    %25 = arith.divf %23, %24 : vector<8x64xf32>
    %26 = vector.extract_strided_slice %25 {offsets = [0, 0], sizes = [8, 32], strides = [1, 1]} : vector<8x64xf32> to vector<8x32xf32>
    %27 = vector.extract_strided_slice %25 {offsets = [0, 32], sizes = [8, 32], strides = [1, 1]} : vector<8x64xf32> to vector<8x32xf32>
    %28 = vector.extract_strided_slice %16 {offsets = [0, 64], sizes = [8, 32], strides = [1, 1]} : vector<8x96xf32> to vector<8x32xf32>
    %29 = vector.extract_strided_slice %17 {offsets = [0, 64], sizes = [8, 32], strides = [1, 1]} : vector<8x96xf32> to vector<8x32xf32>
    %30 = vector.broadcast %7 : vector<1x32xf32> to vector<8x32xf32>
    %31 = arith.addf %29, %30 : vector<8x32xf32>
    %32 = arith.mulf %26, %31 : vector<8x32xf32>
    %33 = arith.addf %28, %32 : vector<8x32xf32>
    %34 = math.tanh %33 : vector<8x32xf32>
    %35 = arith.subf %13, %34 : vector<8x32xf32>
    %36 = arith.mulf %27, %35 : vector<8x32xf32>
    %37 = arith.addf %34, %36 : vector<8x32xf32>
    %38 = arith.subf %37, %13 : vector<8x32xf32>
    %39 = vector.broadcast %15 : vector<8x1xf32> to vector<8x32xf32>
    %40 = arith.mulf %39, %38 : vector<8x32xf32>
    %41 = arith.addf %13, %40 : vector<8x32xf32>
    %cst_23 = arith.constant dense<0.000000e+00> : vector<8x96xf32>
    %42 = tpu.matmul %41, %8, %cst_23 {dimension_numbers = #tpu.dot_dimension_numbers<[1], [0], [0], [1], [0, 0, 1, 1], [], []>} : vector<8x32xf32>, vector<32x96xf32>, vector<8x96xf32> -> vector<8x96xf32>
    %43 = vector.broadcast %10 : vector<1x96xf32> to vector<8x96xf32>
    %44 = arith.addf %42, %43 : vector<8x96xf32>
    %cst_24 = arith.constant dense<0.000000e+00> : vector<8x96xf32>
    %45 = tpu.matmul %14, %9, %cst_24 {dimension_numbers = #tpu.dot_dimension_numbers<[1], [0], [0], [1], [0, 0, 1, 1], [], []>} : vector<8x32xf32>, vector<32x96xf32>, vector<8x96xf32> -> vector<8x96xf32>
    %46 = vector.extract_strided_slice %44 {offsets = [0, 0], sizes = [8, 64], strides = [1, 1]} : vector<8x96xf32> to vector<8x64xf32>
    %47 = vector.extract_strided_slice %45 {offsets = [0, 0], sizes = [8, 64], strides = [1, 1]} : vector<8x96xf32> to vector<8x64xf32>
    %48 = arith.addf %46, %47 : vector<8x64xf32>
    %49 = arith.negf %48 : vector<8x64xf32>
    %50 = math.exp %49 : vector<8x64xf32>
    %cst_25 = arith.constant 1.000000e+00 : f32
    %51 = vector.broadcast %cst_25 : f32 to vector<8x64xf32>
    %52 = arith.addf %51, %50 : vector<8x64xf32>
    %53 = arith.divf %51, %52 : vector<8x64xf32>
    %54 = vector.extract_strided_slice %53 {offsets = [0, 0], sizes = [8, 32], strides = [1, 1]} : vector<8x64xf32> to vector<8x32xf32>
    %55 = vector.extract_strided_slice %53 {offsets = [0, 32], sizes = [8, 32], strides = [1, 1]} : vector<8x64xf32> to vector<8x32xf32>
    %56 = vector.extract_strided_slice %44 {offsets = [0, 64], sizes = [8, 32], strides = [1, 1]} : vector<8x96xf32> to vector<8x32xf32>
    %57 = vector.extract_strided_slice %45 {offsets = [0, 64], sizes = [8, 32], strides = [1, 1]} : vector<8x96xf32> to vector<8x32xf32>
    %58 = vector.broadcast %11 : vector<1x32xf32> to vector<8x32xf32>
    %59 = arith.addf %57, %58 : vector<8x32xf32>
    %60 = arith.mulf %54, %59 : vector<8x32xf32>
    %61 = arith.addf %56, %60 : vector<8x32xf32>
    %62 = math.tanh %61 : vector<8x32xf32>
    %63 = arith.subf %14, %62 : vector<8x32xf32>
    %64 = arith.mulf %55, %63 : vector<8x32xf32>
    %65 = arith.addf %62, %64 : vector<8x32xf32>
    %66 = arith.subf %65, %14 : vector<8x32xf32>
    %67 = vector.broadcast %15 : vector<8x1xf32> to vector<8x32xf32>
    %68 = arith.mulf %67, %66 : vector<8x32xf32>
    %69 = arith.addf %14, %68 : vector<8x32xf32>
    %70 = vector.extract_strided_slice %12 {offsets = [8, 0], sizes = [8, 1], strides = [1, 1]} : vector<64x1xf32> to vector<8x1xf32>
    %71 = vector.extract_strided_slice %5 {offsets = [8, 0], sizes = [8, 96], strides = [1, 1]} : vector<64x96xf32> to vector<8x96xf32>
    %cst_26 = arith.constant dense<0.000000e+00> : vector<8x96xf32>
    %72 = tpu.matmul %41, %6, %cst_26 {dimension_numbers = #tpu.dot_dimension_numbers<[1], [0], [0], [1], [0, 0, 1, 1], [], []>} : vector<8x32xf32>, vector<32x96xf32>, vector<8x96xf32> -> vector<8x96xf32>
    %73 = vector.extract_strided_slice %71 {offsets = [0, 0], sizes = [8, 64], strides = [1, 1]} : vector<8x96xf32> to vector<8x64xf32>
    %74 = vector.extract_strided_slice %72 {offsets = [0, 0], sizes = [8, 64], strides = [1, 1]} : vector<8x96xf32> to vector<8x64xf32>
    %75 = arith.addf %73, %74 : vector<8x64xf32>
    %76 = arith.negf %75 : vector<8x64xf32>
    %77 = math.exp %76 : vector<8x64xf32>
    %cst_27 = arith.constant 1.000000e+00 : f32
    %78 = vector.broadcast %cst_27 : f32 to vector<8x64xf32>
    %79 = arith.addf %78, %77 : vector<8x64xf32>
    %80 = arith.divf %78, %79 : vector<8x64xf32>
    %81 = vector.extract_strided_slice %80 {offsets = [0, 0], sizes = [8, 32], strides = [1, 1]} : vector<8x64xf32> to vector<8x32xf32>
    %82 = vector.extract_strided_slice %80 {offsets = [0, 32], sizes = [8, 32], strides = [1, 1]} : vector<8x64xf32> to vector<8x32xf32>
    %83 = vector.extract_strided_slice %71 {offsets = [0, 64], sizes = [8, 32], strides = [1, 1]} : vector<8x96xf32> to vector<8x32xf32>
    %84 = vector.extract_strided_slice %72 {offsets = [0, 64], sizes = [8, 32], strides = [1, 1]} : vector<8x96xf32> to vector<8x32xf32>
    %85 = vector.broadcast %7 : vector<1x32xf32> to vector<8x32xf32>
    %86 = arith.addf %84, %85 : vector<8x32xf32>
    %87 = arith.mulf %81, %86 : vector<8x32xf32>
    %88 = arith.addf %83, %87 : vector<8x32xf32>
    %89 = math.tanh %88 : vector<8x32xf32>
    %90 = arith.subf %41, %89 : vector<8x32xf32>
    %91 = arith.mulf %82, %90 : vector<8x32xf32>
    %92 = arith.addf %89, %91 : vector<8x32xf32>
    %93 = arith.subf %92, %41 : vector<8x32xf32>
    %94 = vector.broadcast %70 : vector<8x1xf32> to vector<8x32xf32>
    %95 = arith.mulf %94, %93 : vector<8x32xf32>
    %96 = arith.addf %41, %95 : vector<8x32xf32>
    %cst_28 = arith.constant dense<0.000000e+00> : vector<8x96xf32>
    %97 = tpu.matmul %96, %8, %cst_28 {dimension_numbers = #tpu.dot_dimension_numbers<[1], [0], [0], [1], [0, 0, 1, 1], [], []>} : vector<8x32xf32>, vector<32x96xf32>, vector<8x96xf32> -> vector<8x96xf32>
    %98 = vector.broadcast %10 : vector<1x96xf32> to vector<8x96xf32>
    %99 = arith.addf %97, %98 : vector<8x96xf32>
    %cst_29 = arith.constant dense<0.000000e+00> : vector<8x96xf32>
    %100 = tpu.matmul %69, %9, %cst_29 {dimension_numbers = #tpu.dot_dimension_numbers<[1], [0], [0], [1], [0, 0, 1, 1], [], []>} : vector<8x32xf32>, vector<32x96xf32>, vector<8x96xf32> -> vector<8x96xf32>
    %101 = vector.extract_strided_slice %99 {offsets = [0, 0], sizes = [8, 64], strides = [1, 1]} : vector<8x96xf32> to vector<8x64xf32>
    %102 = vector.extract_strided_slice %100 {offsets = [0, 0], sizes = [8, 64], strides = [1, 1]} : vector<8x96xf32> to vector<8x64xf32>
    %103 = arith.addf %101, %102 : vector<8x64xf32>
    %104 = arith.negf %103 : vector<8x64xf32>
    %105 = math.exp %104 : vector<8x64xf32>
    %cst_30 = arith.constant 1.000000e+00 : f32
    %106 = vector.broadcast %cst_30 : f32 to vector<8x64xf32>
    %107 = arith.addf %106, %105 : vector<8x64xf32>
    %108 = arith.divf %106, %107 : vector<8x64xf32>
    %109 = vector.extract_strided_slice %108 {offsets = [0, 0], sizes = [8, 32], strides = [1, 1]} : vector<8x64xf32> to vector<8x32xf32>
    %110 = vector.extract_strided_slice %108 {offsets = [0, 32], sizes = [8, 32], strides = [1, 1]} : vector<8x64xf32> to vector<8x32xf32>
    %111 = vector.extract_strided_slice %99 {offsets = [0, 64], sizes = [8, 32], strides = [1, 1]} : vector<8x96xf32> to vector<8x32xf32>
    %112 = vector.extract_strided_slice %100 {offsets = [0, 64], sizes = [8, 32], strides = [1, 1]} : vector<8x96xf32> to vector<8x32xf32>
    %113 = vector.broadcast %11 : vector<1x32xf32> to vector<8x32xf32>
    %114 = arith.addf %112, %113 : vector<8x32xf32>
    %115 = arith.mulf %109, %114 : vector<8x32xf32>
    %116 = arith.addf %111, %115 : vector<8x32xf32>
    %117 = math.tanh %116 : vector<8x32xf32>
    %118 = arith.subf %69, %117 : vector<8x32xf32>
    %119 = arith.mulf %110, %118 : vector<8x32xf32>
    %120 = arith.addf %117, %119 : vector<8x32xf32>
    %121 = arith.subf %120, %69 : vector<8x32xf32>
    %122 = vector.broadcast %70 : vector<8x1xf32> to vector<8x32xf32>
    %123 = arith.mulf %122, %121 : vector<8x32xf32>
    %124 = arith.addf %69, %123 : vector<8x32xf32>
    %125 = vector.extract_strided_slice %12 {offsets = [16, 0], sizes = [8, 1], strides = [1, 1]} : vector<64x1xf32> to vector<8x1xf32>
    %126 = vector.extract_strided_slice %5 {offsets = [16, 0], sizes = [8, 96], strides = [1, 1]} : vector<64x96xf32> to vector<8x96xf32>
    %cst_31 = arith.constant dense<0.000000e+00> : vector<8x96xf32>
    %127 = tpu.matmul %96, %6, %cst_31 {dimension_numbers = #tpu.dot_dimension_numbers<[1], [0], [0], [1], [0, 0, 1, 1], [], []>} : vector<8x32xf32>, vector<32x96xf32>, vector<8x96xf32> -> vector<8x96xf32>
    %128 = vector.extract_strided_slice %126 {offsets = [0, 0], sizes = [8, 64], strides = [1, 1]} : vector<8x96xf32> to vector<8x64xf32>
    %129 = vector.extract_strided_slice %127 {offsets = [0, 0], sizes = [8, 64], strides = [1, 1]} : vector<8x96xf32> to vector<8x64xf32>
    %130 = arith.addf %128, %129 : vector<8x64xf32>
    %131 = arith.negf %130 : vector<8x64xf32>
    %132 = math.exp %131 : vector<8x64xf32>
    %cst_32 = arith.constant 1.000000e+00 : f32
    %133 = vector.broadcast %cst_32 : f32 to vector<8x64xf32>
    %134 = arith.addf %133, %132 : vector<8x64xf32>
    %135 = arith.divf %133, %134 : vector<8x64xf32>
    %136 = vector.extract_strided_slice %135 {offsets = [0, 0], sizes = [8, 32], strides = [1, 1]} : vector<8x64xf32> to vector<8x32xf32>
    %137 = vector.extract_strided_slice %135 {offsets = [0, 32], sizes = [8, 32], strides = [1, 1]} : vector<8x64xf32> to vector<8x32xf32>
    %138 = vector.extract_strided_slice %126 {offsets = [0, 64], sizes = [8, 32], strides = [1, 1]} : vector<8x96xf32> to vector<8x32xf32>
    %139 = vector.extract_strided_slice %127 {offsets = [0, 64], sizes = [8, 32], strides = [1, 1]} : vector<8x96xf32> to vector<8x32xf32>
    %140 = vector.broadcast %7 : vector<1x32xf32> to vector<8x32xf32>
    %141 = arith.addf %139, %140 : vector<8x32xf32>
    %142 = arith.mulf %136, %141 : vector<8x32xf32>
    %143 = arith.addf %138, %142 : vector<8x32xf32>
    %144 = math.tanh %143 : vector<8x32xf32>
    %145 = arith.subf %96, %144 : vector<8x32xf32>
    %146 = arith.mulf %137, %145 : vector<8x32xf32>
    %147 = arith.addf %144, %146 : vector<8x32xf32>
    %148 = arith.subf %147, %96 : vector<8x32xf32>
    %149 = vector.broadcast %125 : vector<8x1xf32> to vector<8x32xf32>
    %150 = arith.mulf %149, %148 : vector<8x32xf32>
    %151 = arith.addf %96, %150 : vector<8x32xf32>
    %cst_33 = arith.constant dense<0.000000e+00> : vector<8x96xf32>
    %152 = tpu.matmul %151, %8, %cst_33 {dimension_numbers = #tpu.dot_dimension_numbers<[1], [0], [0], [1], [0, 0, 1, 1], [], []>} : vector<8x32xf32>, vector<32x96xf32>, vector<8x96xf32> -> vector<8x96xf32>
    %153 = vector.broadcast %10 : vector<1x96xf32> to vector<8x96xf32>
    %154 = arith.addf %152, %153 : vector<8x96xf32>
    %cst_34 = arith.constant dense<0.000000e+00> : vector<8x96xf32>
    %155 = tpu.matmul %124, %9, %cst_34 {dimension_numbers = #tpu.dot_dimension_numbers<[1], [0], [0], [1], [0, 0, 1, 1], [], []>} : vector<8x32xf32>, vector<32x96xf32>, vector<8x96xf32> -> vector<8x96xf32>
    %156 = vector.extract_strided_slice %154 {offsets = [0, 0], sizes = [8, 64], strides = [1, 1]} : vector<8x96xf32> to vector<8x64xf32>
    %157 = vector.extract_strided_slice %155 {offsets = [0, 0], sizes = [8, 64], strides = [1, 1]} : vector<8x96xf32> to vector<8x64xf32>
    %158 = arith.addf %156, %157 : vector<8x64xf32>
    %159 = arith.negf %158 : vector<8x64xf32>
    %160 = math.exp %159 : vector<8x64xf32>
    %cst_35 = arith.constant 1.000000e+00 : f32
    %161 = vector.broadcast %cst_35 : f32 to vector<8x64xf32>
    %162 = arith.addf %161, %160 : vector<8x64xf32>
    %163 = arith.divf %161, %162 : vector<8x64xf32>
    %164 = vector.extract_strided_slice %163 {offsets = [0, 0], sizes = [8, 32], strides = [1, 1]} : vector<8x64xf32> to vector<8x32xf32>
    %165 = vector.extract_strided_slice %163 {offsets = [0, 32], sizes = [8, 32], strides = [1, 1]} : vector<8x64xf32> to vector<8x32xf32>
    %166 = vector.extract_strided_slice %154 {offsets = [0, 64], sizes = [8, 32], strides = [1, 1]} : vector<8x96xf32> to vector<8x32xf32>
    %167 = vector.extract_strided_slice %155 {offsets = [0, 64], sizes = [8, 32], strides = [1, 1]} : vector<8x96xf32> to vector<8x32xf32>
    %168 = vector.broadcast %11 : vector<1x32xf32> to vector<8x32xf32>
    %169 = arith.addf %167, %168 : vector<8x32xf32>
    %170 = arith.mulf %164, %169 : vector<8x32xf32>
    %171 = arith.addf %166, %170 : vector<8x32xf32>
    %172 = math.tanh %171 : vector<8x32xf32>
    %173 = arith.subf %124, %172 : vector<8x32xf32>
    %174 = arith.mulf %165, %173 : vector<8x32xf32>
    %175 = arith.addf %172, %174 : vector<8x32xf32>
    %176 = arith.subf %175, %124 : vector<8x32xf32>
    %177 = vector.broadcast %125 : vector<8x1xf32> to vector<8x32xf32>
    %178 = arith.mulf %177, %176 : vector<8x32xf32>
    %179 = arith.addf %124, %178 : vector<8x32xf32>
    %180 = vector.extract_strided_slice %12 {offsets = [24, 0], sizes = [8, 1], strides = [1, 1]} : vector<64x1xf32> to vector<8x1xf32>
    %181 = vector.extract_strided_slice %5 {offsets = [24, 0], sizes = [8, 96], strides = [1, 1]} : vector<64x96xf32> to vector<8x96xf32>
    %cst_36 = arith.constant dense<0.000000e+00> : vector<8x96xf32>
    %182 = tpu.matmul %151, %6, %cst_36 {dimension_numbers = #tpu.dot_dimension_numbers<[1], [0], [0], [1], [0, 0, 1, 1], [], []>} : vector<8x32xf32>, vector<32x96xf32>, vector<8x96xf32> -> vector<8x96xf32>
    %183 = vector.extract_strided_slice %181 {offsets = [0, 0], sizes = [8, 64], strides = [1, 1]} : vector<8x96xf32> to vector<8x64xf32>
    %184 = vector.extract_strided_slice %182 {offsets = [0, 0], sizes = [8, 64], strides = [1, 1]} : vector<8x96xf32> to vector<8x64xf32>
    %185 = arith.addf %183, %184 : vector<8x64xf32>
    %186 = arith.negf %185 : vector<8x64xf32>
    %187 = math.exp %186 : vector<8x64xf32>
    %cst_37 = arith.constant 1.000000e+00 : f32
    %188 = vector.broadcast %cst_37 : f32 to vector<8x64xf32>
    %189 = arith.addf %188, %187 : vector<8x64xf32>
    %190 = arith.divf %188, %189 : vector<8x64xf32>
    %191 = vector.extract_strided_slice %190 {offsets = [0, 0], sizes = [8, 32], strides = [1, 1]} : vector<8x64xf32> to vector<8x32xf32>
    %192 = vector.extract_strided_slice %190 {offsets = [0, 32], sizes = [8, 32], strides = [1, 1]} : vector<8x64xf32> to vector<8x32xf32>
    %193 = vector.extract_strided_slice %181 {offsets = [0, 64], sizes = [8, 32], strides = [1, 1]} : vector<8x96xf32> to vector<8x32xf32>
    %194 = vector.extract_strided_slice %182 {offsets = [0, 64], sizes = [8, 32], strides = [1, 1]} : vector<8x96xf32> to vector<8x32xf32>
    %195 = vector.broadcast %7 : vector<1x32xf32> to vector<8x32xf32>
    %196 = arith.addf %194, %195 : vector<8x32xf32>
    %197 = arith.mulf %191, %196 : vector<8x32xf32>
    %198 = arith.addf %193, %197 : vector<8x32xf32>
    %199 = math.tanh %198 : vector<8x32xf32>
    %200 = arith.subf %151, %199 : vector<8x32xf32>
    %201 = arith.mulf %192, %200 : vector<8x32xf32>
    %202 = arith.addf %199, %201 : vector<8x32xf32>
    %203 = arith.subf %202, %151 : vector<8x32xf32>
    %204 = vector.broadcast %180 : vector<8x1xf32> to vector<8x32xf32>
    %205 = arith.mulf %204, %203 : vector<8x32xf32>
    %206 = arith.addf %151, %205 : vector<8x32xf32>
    %cst_38 = arith.constant dense<0.000000e+00> : vector<8x96xf32>
    %207 = tpu.matmul %206, %8, %cst_38 {dimension_numbers = #tpu.dot_dimension_numbers<[1], [0], [0], [1], [0, 0, 1, 1], [], []>} : vector<8x32xf32>, vector<32x96xf32>, vector<8x96xf32> -> vector<8x96xf32>
    %208 = vector.broadcast %10 : vector<1x96xf32> to vector<8x96xf32>
    %209 = arith.addf %207, %208 : vector<8x96xf32>
    %cst_39 = arith.constant dense<0.000000e+00> : vector<8x96xf32>
    %210 = tpu.matmul %179, %9, %cst_39 {dimension_numbers = #tpu.dot_dimension_numbers<[1], [0], [0], [1], [0, 0, 1, 1], [], []>} : vector<8x32xf32>, vector<32x96xf32>, vector<8x96xf32> -> vector<8x96xf32>
    %211 = vector.extract_strided_slice %209 {offsets = [0, 0], sizes = [8, 64], strides = [1, 1]} : vector<8x96xf32> to vector<8x64xf32>
    %212 = vector.extract_strided_slice %210 {offsets = [0, 0], sizes = [8, 64], strides = [1, 1]} : vector<8x96xf32> to vector<8x64xf32>
    %213 = arith.addf %211, %212 : vector<8x64xf32>
    %214 = arith.negf %213 : vector<8x64xf32>
    %215 = math.exp %214 : vector<8x64xf32>
    %cst_40 = arith.constant 1.000000e+00 : f32
    %216 = vector.broadcast %cst_40 : f32 to vector<8x64xf32>
    %217 = arith.addf %216, %215 : vector<8x64xf32>
    %218 = arith.divf %216, %217 : vector<8x64xf32>
    %219 = vector.extract_strided_slice %218 {offsets = [0, 0], sizes = [8, 32], strides = [1, 1]} : vector<8x64xf32> to vector<8x32xf32>
    %220 = vector.extract_strided_slice %218 {offsets = [0, 32], sizes = [8, 32], strides = [1, 1]} : vector<8x64xf32> to vector<8x32xf32>
    %221 = vector.extract_strided_slice %209 {offsets = [0, 64], sizes = [8, 32], strides = [1, 1]} : vector<8x96xf32> to vector<8x32xf32>
    %222 = vector.extract_strided_slice %210 {offsets = [0, 64], sizes = [8, 32], strides = [1, 1]} : vector<8x96xf32> to vector<8x32xf32>
    %223 = vector.broadcast %11 : vector<1x32xf32> to vector<8x32xf32>
    %224 = arith.addf %222, %223 : vector<8x32xf32>
    %225 = arith.mulf %219, %224 : vector<8x32xf32>
    %226 = arith.addf %221, %225 : vector<8x32xf32>
    %227 = math.tanh %226 : vector<8x32xf32>
    %228 = arith.subf %179, %227 : vector<8x32xf32>
    %229 = arith.mulf %220, %228 : vector<8x32xf32>
    %230 = arith.addf %227, %229 : vector<8x32xf32>
    %231 = arith.subf %230, %179 : vector<8x32xf32>
    %232 = vector.broadcast %180 : vector<8x1xf32> to vector<8x32xf32>
    %233 = arith.mulf %232, %231 : vector<8x32xf32>
    %234 = arith.addf %179, %233 : vector<8x32xf32>
    %235 = vector.extract_strided_slice %12 {offsets = [32, 0], sizes = [8, 1], strides = [1, 1]} : vector<64x1xf32> to vector<8x1xf32>
    %236 = vector.extract_strided_slice %5 {offsets = [32, 0], sizes = [8, 96], strides = [1, 1]} : vector<64x96xf32> to vector<8x96xf32>
    %cst_41 = arith.constant dense<0.000000e+00> : vector<8x96xf32>
    %237 = tpu.matmul %206, %6, %cst_41 {dimension_numbers = #tpu.dot_dimension_numbers<[1], [0], [0], [1], [0, 0, 1, 1], [], []>} : vector<8x32xf32>, vector<32x96xf32>, vector<8x96xf32> -> vector<8x96xf32>
    %238 = vector.extract_strided_slice %236 {offsets = [0, 0], sizes = [8, 64], strides = [1, 1]} : vector<8x96xf32> to vector<8x64xf32>
    %239 = vector.extract_strided_slice %237 {offsets = [0, 0], sizes = [8, 64], strides = [1, 1]} : vector<8x96xf32> to vector<8x64xf32>
    %240 = arith.addf %238, %239 : vector<8x64xf32>
    %241 = arith.negf %240 : vector<8x64xf32>
    %242 = math.exp %241 : vector<8x64xf32>
    %cst_42 = arith.constant 1.000000e+00 : f32
    %243 = vector.broadcast %cst_42 : f32 to vector<8x64xf32>
    %244 = arith.addf %243, %242 : vector<8x64xf32>
    %245 = arith.divf %243, %244 : vector<8x64xf32>
    %246 = vector.extract_strided_slice %245 {offsets = [0, 0], sizes = [8, 32], strides = [1, 1]} : vector<8x64xf32> to vector<8x32xf32>
    %247 = vector.extract_strided_slice %245 {offsets = [0, 32], sizes = [8, 32], strides = [1, 1]} : vector<8x64xf32> to vector<8x32xf32>
    %248 = vector.extract_strided_slice %236 {offsets = [0, 64], sizes = [8, 32], strides = [1, 1]} : vector<8x96xf32> to vector<8x32xf32>
    %249 = vector.extract_strided_slice %237 {offsets = [0, 64], sizes = [8, 32], strides = [1, 1]} : vector<8x96xf32> to vector<8x32xf32>
    %250 = vector.broadcast %7 : vector<1x32xf32> to vector<8x32xf32>
    %251 = arith.addf %249, %250 : vector<8x32xf32>
    %252 = arith.mulf %246, %251 : vector<8x32xf32>
    %253 = arith.addf %248, %252 : vector<8x32xf32>
    %254 = math.tanh %253 : vector<8x32xf32>
    %255 = arith.subf %206, %254 : vector<8x32xf32>
    %256 = arith.mulf %247, %255 : vector<8x32xf32>
    %257 = arith.addf %254, %256 : vector<8x32xf32>
    %258 = arith.subf %257, %206 : vector<8x32xf32>
    %259 = vector.broadcast %235 : vector<8x1xf32> to vector<8x32xf32>
    %260 = arith.mulf %259, %258 : vector<8x32xf32>
    %261 = arith.addf %206, %260 : vector<8x32xf32>
    %cst_43 = arith.constant dense<0.000000e+00> : vector<8x96xf32>
    %262 = tpu.matmul %261, %8, %cst_43 {dimension_numbers = #tpu.dot_dimension_numbers<[1], [0], [0], [1], [0, 0, 1, 1], [], []>} : vector<8x32xf32>, vector<32x96xf32>, vector<8x96xf32> -> vector<8x96xf32>
    %263 = vector.broadcast %10 : vector<1x96xf32> to vector<8x96xf32>
    %264 = arith.addf %262, %263 : vector<8x96xf32>
    %cst_44 = arith.constant dense<0.000000e+00> : vector<8x96xf32>
    %265 = tpu.matmul %234, %9, %cst_44 {dimension_numbers = #tpu.dot_dimension_numbers<[1], [0], [0], [1], [0, 0, 1, 1], [], []>} : vector<8x32xf32>, vector<32x96xf32>, vector<8x96xf32> -> vector<8x96xf32>
    %266 = vector.extract_strided_slice %264 {offsets = [0, 0], sizes = [8, 64], strides = [1, 1]} : vector<8x96xf32> to vector<8x64xf32>
    %267 = vector.extract_strided_slice %265 {offsets = [0, 0], sizes = [8, 64], strides = [1, 1]} : vector<8x96xf32> to vector<8x64xf32>
    %268 = arith.addf %266, %267 : vector<8x64xf32>
    %269 = arith.negf %268 : vector<8x64xf32>
    %270 = math.exp %269 : vector<8x64xf32>
    %cst_45 = arith.constant 1.000000e+00 : f32
    %271 = vector.broadcast %cst_45 : f32 to vector<8x64xf32>
    %272 = arith.addf %271, %270 : vector<8x64xf32>
    %273 = arith.divf %271, %272 : vector<8x64xf32>
    %274 = vector.extract_strided_slice %273 {offsets = [0, 0], sizes = [8, 32], strides = [1, 1]} : vector<8x64xf32> to vector<8x32xf32>
    %275 = vector.extract_strided_slice %273 {offsets = [0, 32], sizes = [8, 32], strides = [1, 1]} : vector<8x64xf32> to vector<8x32xf32>
    %276 = vector.extract_strided_slice %264 {offsets = [0, 64], sizes = [8, 32], strides = [1, 1]} : vector<8x96xf32> to vector<8x32xf32>
    %277 = vector.extract_strided_slice %265 {offsets = [0, 64], sizes = [8, 32], strides = [1, 1]} : vector<8x96xf32> to vector<8x32xf32>
    %278 = vector.broadcast %11 : vector<1x32xf32> to vector<8x32xf32>
    %279 = arith.addf %277, %278 : vector<8x32xf32>
    %280 = arith.mulf %274, %279 : vector<8x32xf32>
    %281 = arith.addf %276, %280 : vector<8x32xf32>
    %282 = math.tanh %281 : vector<8x32xf32>
    %283 = arith.subf %234, %282 : vector<8x32xf32>
    %284 = arith.mulf %275, %283 : vector<8x32xf32>
    %285 = arith.addf %282, %284 : vector<8x32xf32>
    %286 = arith.subf %285, %234 : vector<8x32xf32>
    %287 = vector.broadcast %235 : vector<8x1xf32> to vector<8x32xf32>
    %288 = arith.mulf %287, %286 : vector<8x32xf32>
    %289 = arith.addf %234, %288 : vector<8x32xf32>
    %290 = vector.extract_strided_slice %12 {offsets = [40, 0], sizes = [8, 1], strides = [1, 1]} : vector<64x1xf32> to vector<8x1xf32>
    %291 = vector.extract_strided_slice %5 {offsets = [40, 0], sizes = [8, 96], strides = [1, 1]} : vector<64x96xf32> to vector<8x96xf32>
    %cst_46 = arith.constant dense<0.000000e+00> : vector<8x96xf32>
    %292 = tpu.matmul %261, %6, %cst_46 {dimension_numbers = #tpu.dot_dimension_numbers<[1], [0], [0], [1], [0, 0, 1, 1], [], []>} : vector<8x32xf32>, vector<32x96xf32>, vector<8x96xf32> -> vector<8x96xf32>
    %293 = vector.extract_strided_slice %291 {offsets = [0, 0], sizes = [8, 64], strides = [1, 1]} : vector<8x96xf32> to vector<8x64xf32>
    %294 = vector.extract_strided_slice %292 {offsets = [0, 0], sizes = [8, 64], strides = [1, 1]} : vector<8x96xf32> to vector<8x64xf32>
    %295 = arith.addf %293, %294 : vector<8x64xf32>
    %296 = arith.negf %295 : vector<8x64xf32>
    %297 = math.exp %296 : vector<8x64xf32>
    %cst_47 = arith.constant 1.000000e+00 : f32
    %298 = vector.broadcast %cst_47 : f32 to vector<8x64xf32>
    %299 = arith.addf %298, %297 : vector<8x64xf32>
    %300 = arith.divf %298, %299 : vector<8x64xf32>
    %301 = vector.extract_strided_slice %300 {offsets = [0, 0], sizes = [8, 32], strides = [1, 1]} : vector<8x64xf32> to vector<8x32xf32>
    %302 = vector.extract_strided_slice %300 {offsets = [0, 32], sizes = [8, 32], strides = [1, 1]} : vector<8x64xf32> to vector<8x32xf32>
    %303 = vector.extract_strided_slice %291 {offsets = [0, 64], sizes = [8, 32], strides = [1, 1]} : vector<8x96xf32> to vector<8x32xf32>
    %304 = vector.extract_strided_slice %292 {offsets = [0, 64], sizes = [8, 32], strides = [1, 1]} : vector<8x96xf32> to vector<8x32xf32>
    %305 = vector.broadcast %7 : vector<1x32xf32> to vector<8x32xf32>
    %306 = arith.addf %304, %305 : vector<8x32xf32>
    %307 = arith.mulf %301, %306 : vector<8x32xf32>
    %308 = arith.addf %303, %307 : vector<8x32xf32>
    %309 = math.tanh %308 : vector<8x32xf32>
    %310 = arith.subf %261, %309 : vector<8x32xf32>
    %311 = arith.mulf %302, %310 : vector<8x32xf32>
    %312 = arith.addf %309, %311 : vector<8x32xf32>
    %313 = arith.subf %312, %261 : vector<8x32xf32>
    %314 = vector.broadcast %290 : vector<8x1xf32> to vector<8x32xf32>
    %315 = arith.mulf %314, %313 : vector<8x32xf32>
    %316 = arith.addf %261, %315 : vector<8x32xf32>
    %cst_48 = arith.constant dense<0.000000e+00> : vector<8x96xf32>
    %317 = tpu.matmul %316, %8, %cst_48 {dimension_numbers = #tpu.dot_dimension_numbers<[1], [0], [0], [1], [0, 0, 1, 1], [], []>} : vector<8x32xf32>, vector<32x96xf32>, vector<8x96xf32> -> vector<8x96xf32>
    %318 = vector.broadcast %10 : vector<1x96xf32> to vector<8x96xf32>
    %319 = arith.addf %317, %318 : vector<8x96xf32>
    %cst_49 = arith.constant dense<0.000000e+00> : vector<8x96xf32>
    %320 = tpu.matmul %289, %9, %cst_49 {dimension_numbers = #tpu.dot_dimension_numbers<[1], [0], [0], [1], [0, 0, 1, 1], [], []>} : vector<8x32xf32>, vector<32x96xf32>, vector<8x96xf32> -> vector<8x96xf32>
    %321 = vector.extract_strided_slice %319 {offsets = [0, 0], sizes = [8, 64], strides = [1, 1]} : vector<8x96xf32> to vector<8x64xf32>
    %322 = vector.extract_strided_slice %320 {offsets = [0, 0], sizes = [8, 64], strides = [1, 1]} : vector<8x96xf32> to vector<8x64xf32>
    %323 = arith.addf %321, %322 : vector<8x64xf32>
    %324 = arith.negf %323 : vector<8x64xf32>
    %325 = math.exp %324 : vector<8x64xf32>
    %cst_50 = arith.constant 1.000000e+00 : f32
    %326 = vector.broadcast %cst_50 : f32 to vector<8x64xf32>
    %327 = arith.addf %326, %325 : vector<8x64xf32>
    %328 = arith.divf %326, %327 : vector<8x64xf32>
    %329 = vector.extract_strided_slice %328 {offsets = [0, 0], sizes = [8, 32], strides = [1, 1]} : vector<8x64xf32> to vector<8x32xf32>
    %330 = vector.extract_strided_slice %328 {offsets = [0, 32], sizes = [8, 32], strides = [1, 1]} : vector<8x64xf32> to vector<8x32xf32>
    %331 = vector.extract_strided_slice %319 {offsets = [0, 64], sizes = [8, 32], strides = [1, 1]} : vector<8x96xf32> to vector<8x32xf32>
    %332 = vector.extract_strided_slice %320 {offsets = [0, 64], sizes = [8, 32], strides = [1, 1]} : vector<8x96xf32> to vector<8x32xf32>
    %333 = vector.broadcast %11 : vector<1x32xf32> to vector<8x32xf32>
    %334 = arith.addf %332, %333 : vector<8x32xf32>
    %335 = arith.mulf %329, %334 : vector<8x32xf32>
    %336 = arith.addf %331, %335 : vector<8x32xf32>
    %337 = math.tanh %336 : vector<8x32xf32>
    %338 = arith.subf %289, %337 : vector<8x32xf32>
    %339 = arith.mulf %330, %338 : vector<8x32xf32>
    %340 = arith.addf %337, %339 : vector<8x32xf32>
    %341 = arith.subf %340, %289 : vector<8x32xf32>
    %342 = vector.broadcast %290 : vector<8x1xf32> to vector<8x32xf32>
    %343 = arith.mulf %342, %341 : vector<8x32xf32>
    %344 = arith.addf %289, %343 : vector<8x32xf32>
    %345 = vector.extract_strided_slice %12 {offsets = [48, 0], sizes = [8, 1], strides = [1, 1]} : vector<64x1xf32> to vector<8x1xf32>
    %346 = vector.extract_strided_slice %5 {offsets = [48, 0], sizes = [8, 96], strides = [1, 1]} : vector<64x96xf32> to vector<8x96xf32>
    %cst_51 = arith.constant dense<0.000000e+00> : vector<8x96xf32>
    %347 = tpu.matmul %316, %6, %cst_51 {dimension_numbers = #tpu.dot_dimension_numbers<[1], [0], [0], [1], [0, 0, 1, 1], [], []>} : vector<8x32xf32>, vector<32x96xf32>, vector<8x96xf32> -> vector<8x96xf32>
    %348 = vector.extract_strided_slice %346 {offsets = [0, 0], sizes = [8, 64], strides = [1, 1]} : vector<8x96xf32> to vector<8x64xf32>
    %349 = vector.extract_strided_slice %347 {offsets = [0, 0], sizes = [8, 64], strides = [1, 1]} : vector<8x96xf32> to vector<8x64xf32>
    %350 = arith.addf %348, %349 : vector<8x64xf32>
    %351 = arith.negf %350 : vector<8x64xf32>
    %352 = math.exp %351 : vector<8x64xf32>
    %cst_52 = arith.constant 1.000000e+00 : f32
    %353 = vector.broadcast %cst_52 : f32 to vector<8x64xf32>
    %354 = arith.addf %353, %352 : vector<8x64xf32>
    %355 = arith.divf %353, %354 : vector<8x64xf32>
    %356 = vector.extract_strided_slice %355 {offsets = [0, 0], sizes = [8, 32], strides = [1, 1]} : vector<8x64xf32> to vector<8x32xf32>
    %357 = vector.extract_strided_slice %355 {offsets = [0, 32], sizes = [8, 32], strides = [1, 1]} : vector<8x64xf32> to vector<8x32xf32>
    %358 = vector.extract_strided_slice %346 {offsets = [0, 64], sizes = [8, 32], strides = [1, 1]} : vector<8x96xf32> to vector<8x32xf32>
    %359 = vector.extract_strided_slice %347 {offsets = [0, 64], sizes = [8, 32], strides = [1, 1]} : vector<8x96xf32> to vector<8x32xf32>
    %360 = vector.broadcast %7 : vector<1x32xf32> to vector<8x32xf32>
    %361 = arith.addf %359, %360 : vector<8x32xf32>
    %362 = arith.mulf %356, %361 : vector<8x32xf32>
    %363 = arith.addf %358, %362 : vector<8x32xf32>
    %364 = math.tanh %363 : vector<8x32xf32>
    %365 = arith.subf %316, %364 : vector<8x32xf32>
    %366 = arith.mulf %357, %365 : vector<8x32xf32>
    %367 = arith.addf %364, %366 : vector<8x32xf32>
    %368 = arith.subf %367, %316 : vector<8x32xf32>
    %369 = vector.broadcast %345 : vector<8x1xf32> to vector<8x32xf32>
    %370 = arith.mulf %369, %368 : vector<8x32xf32>
    %371 = arith.addf %316, %370 : vector<8x32xf32>
    %cst_53 = arith.constant dense<0.000000e+00> : vector<8x96xf32>
    %372 = tpu.matmul %371, %8, %cst_53 {dimension_numbers = #tpu.dot_dimension_numbers<[1], [0], [0], [1], [0, 0, 1, 1], [], []>} : vector<8x32xf32>, vector<32x96xf32>, vector<8x96xf32> -> vector<8x96xf32>
    %373 = vector.broadcast %10 : vector<1x96xf32> to vector<8x96xf32>
    %374 = arith.addf %372, %373 : vector<8x96xf32>
    %cst_54 = arith.constant dense<0.000000e+00> : vector<8x96xf32>
    %375 = tpu.matmul %344, %9, %cst_54 {dimension_numbers = #tpu.dot_dimension_numbers<[1], [0], [0], [1], [0, 0, 1, 1], [], []>} : vector<8x32xf32>, vector<32x96xf32>, vector<8x96xf32> -> vector<8x96xf32>
    %376 = vector.extract_strided_slice %374 {offsets = [0, 0], sizes = [8, 64], strides = [1, 1]} : vector<8x96xf32> to vector<8x64xf32>
    %377 = vector.extract_strided_slice %375 {offsets = [0, 0], sizes = [8, 64], strides = [1, 1]} : vector<8x96xf32> to vector<8x64xf32>
    %378 = arith.addf %376, %377 : vector<8x64xf32>
    %379 = arith.negf %378 : vector<8x64xf32>
    %380 = math.exp %379 : vector<8x64xf32>
    %cst_55 = arith.constant 1.000000e+00 : f32
    %381 = vector.broadcast %cst_55 : f32 to vector<8x64xf32>
    %382 = arith.addf %381, %380 : vector<8x64xf32>
    %383 = arith.divf %381, %382 : vector<8x64xf32>
    %384 = vector.extract_strided_slice %383 {offsets = [0, 0], sizes = [8, 32], strides = [1, 1]} : vector<8x64xf32> to vector<8x32xf32>
    %385 = vector.extract_strided_slice %383 {offsets = [0, 32], sizes = [8, 32], strides = [1, 1]} : vector<8x64xf32> to vector<8x32xf32>
    %386 = vector.extract_strided_slice %374 {offsets = [0, 64], sizes = [8, 32], strides = [1, 1]} : vector<8x96xf32> to vector<8x32xf32>
    %387 = vector.extract_strided_slice %375 {offsets = [0, 64], sizes = [8, 32], strides = [1, 1]} : vector<8x96xf32> to vector<8x32xf32>
    %388 = vector.broadcast %11 : vector<1x32xf32> to vector<8x32xf32>
    %389 = arith.addf %387, %388 : vector<8x32xf32>
    %390 = arith.mulf %384, %389 : vector<8x32xf32>
    %391 = arith.addf %386, %390 : vector<8x32xf32>
    %392 = math.tanh %391 : vector<8x32xf32>
    %393 = arith.subf %344, %392 : vector<8x32xf32>
    %394 = arith.mulf %385, %393 : vector<8x32xf32>
    %395 = arith.addf %392, %394 : vector<8x32xf32>
    %396 = arith.subf %395, %344 : vector<8x32xf32>
    %397 = vector.broadcast %345 : vector<8x1xf32> to vector<8x32xf32>
    %398 = arith.mulf %397, %396 : vector<8x32xf32>
    %399 = arith.addf %344, %398 : vector<8x32xf32>
    %400 = vector.extract_strided_slice %12 {offsets = [56, 0], sizes = [8, 1], strides = [1, 1]} : vector<64x1xf32> to vector<8x1xf32>
    %401 = vector.extract_strided_slice %5 {offsets = [56, 0], sizes = [8, 96], strides = [1, 1]} : vector<64x96xf32> to vector<8x96xf32>
    %cst_56 = arith.constant dense<0.000000e+00> : vector<8x96xf32>
    %402 = tpu.matmul %371, %6, %cst_56 {dimension_numbers = #tpu.dot_dimension_numbers<[1], [0], [0], [1], [0, 0, 1, 1], [], []>} : vector<8x32xf32>, vector<32x96xf32>, vector<8x96xf32> -> vector<8x96xf32>
    %403 = vector.extract_strided_slice %401 {offsets = [0, 0], sizes = [8, 64], strides = [1, 1]} : vector<8x96xf32> to vector<8x64xf32>
    %404 = vector.extract_strided_slice %402 {offsets = [0, 0], sizes = [8, 64], strides = [1, 1]} : vector<8x96xf32> to vector<8x64xf32>
    %405 = arith.addf %403, %404 : vector<8x64xf32>
    %406 = arith.negf %405 : vector<8x64xf32>
    %407 = math.exp %406 : vector<8x64xf32>
    %cst_57 = arith.constant 1.000000e+00 : f32
    %408 = vector.broadcast %cst_57 : f32 to vector<8x64xf32>
    %409 = arith.addf %408, %407 : vector<8x64xf32>
    %410 = arith.divf %408, %409 : vector<8x64xf32>
    %411 = vector.extract_strided_slice %410 {offsets = [0, 0], sizes = [8, 32], strides = [1, 1]} : vector<8x64xf32> to vector<8x32xf32>
    %412 = vector.extract_strided_slice %410 {offsets = [0, 32], sizes = [8, 32], strides = [1, 1]} : vector<8x64xf32> to vector<8x32xf32>
    %413 = vector.extract_strided_slice %401 {offsets = [0, 64], sizes = [8, 32], strides = [1, 1]} : vector<8x96xf32> to vector<8x32xf32>
    %414 = vector.extract_strided_slice %402 {offsets = [0, 64], sizes = [8, 32], strides = [1, 1]} : vector<8x96xf32> to vector<8x32xf32>
    %415 = vector.broadcast %7 : vector<1x32xf32> to vector<8x32xf32>
    %416 = arith.addf %414, %415 : vector<8x32xf32>
    %417 = arith.mulf %411, %416 : vector<8x32xf32>
    %418 = arith.addf %413, %417 : vector<8x32xf32>
    %419 = math.tanh %418 : vector<8x32xf32>
    %420 = arith.subf %371, %419 : vector<8x32xf32>
    %421 = arith.mulf %412, %420 : vector<8x32xf32>
    %422 = arith.addf %419, %421 : vector<8x32xf32>
    %423 = arith.subf %422, %371 : vector<8x32xf32>
    %424 = vector.broadcast %400 : vector<8x1xf32> to vector<8x32xf32>
    %425 = arith.mulf %424, %423 : vector<8x32xf32>
    %426 = arith.addf %371, %425 : vector<8x32xf32>
    %cst_58 = arith.constant dense<0.000000e+00> : vector<8x96xf32>
    %427 = tpu.matmul %426, %8, %cst_58 {dimension_numbers = #tpu.dot_dimension_numbers<[1], [0], [0], [1], [0, 0, 1, 1], [], []>} : vector<8x32xf32>, vector<32x96xf32>, vector<8x96xf32> -> vector<8x96xf32>
    %428 = vector.broadcast %10 : vector<1x96xf32> to vector<8x96xf32>
    %429 = arith.addf %427, %428 : vector<8x96xf32>
    %cst_59 = arith.constant dense<0.000000e+00> : vector<8x96xf32>
    %430 = tpu.matmul %399, %9, %cst_59 {dimension_numbers = #tpu.dot_dimension_numbers<[1], [0], [0], [1], [0, 0, 1, 1], [], []>} : vector<8x32xf32>, vector<32x96xf32>, vector<8x96xf32> -> vector<8x96xf32>
    %431 = vector.extract_strided_slice %429 {offsets = [0, 0], sizes = [8, 64], strides = [1, 1]} : vector<8x96xf32> to vector<8x64xf32>
    %432 = vector.extract_strided_slice %430 {offsets = [0, 0], sizes = [8, 64], strides = [1, 1]} : vector<8x96xf32> to vector<8x64xf32>
    %433 = arith.addf %431, %432 : vector<8x64xf32>
    %434 = arith.negf %433 : vector<8x64xf32>
    %435 = math.exp %434 : vector<8x64xf32>
    %cst_60 = arith.constant 1.000000e+00 : f32
    %436 = vector.broadcast %cst_60 : f32 to vector<8x64xf32>
    %437 = arith.addf %436, %435 : vector<8x64xf32>
    %438 = arith.divf %436, %437 : vector<8x64xf32>
    %439 = vector.extract_strided_slice %438 {offsets = [0, 0], sizes = [8, 32], strides = [1, 1]} : vector<8x64xf32> to vector<8x32xf32>
    %440 = vector.extract_strided_slice %438 {offsets = [0, 32], sizes = [8, 32], strides = [1, 1]} : vector<8x64xf32> to vector<8x32xf32>
    %441 = vector.extract_strided_slice %429 {offsets = [0, 64], sizes = [8, 32], strides = [1, 1]} : vector<8x96xf32> to vector<8x32xf32>
    %442 = vector.extract_strided_slice %430 {offsets = [0, 64], sizes = [8, 32], strides = [1, 1]} : vector<8x96xf32> to vector<8x32xf32>
    %443 = vector.broadcast %11 : vector<1x32xf32> to vector<8x32xf32>
    %444 = arith.addf %442, %443 : vector<8x32xf32>
    %445 = arith.mulf %439, %444 : vector<8x32xf32>
    %446 = arith.addf %441, %445 : vector<8x32xf32>
    %447 = math.tanh %446 : vector<8x32xf32>
    %448 = arith.subf %399, %447 : vector<8x32xf32>
    %449 = arith.mulf %440, %448 : vector<8x32xf32>
    %450 = arith.addf %447, %449 : vector<8x32xf32>
    %451 = arith.subf %450, %399 : vector<8x32xf32>
    %452 = vector.broadcast %400 : vector<8x1xf32> to vector<8x32xf32>
    %453 = arith.mulf %452, %451 : vector<8x32xf32>
    %454 = arith.addf %399, %453 : vector<8x32xf32>
    %c0_61 = arith.constant 0 : index
    %c0_62 = arith.constant 0 : index
    %455 = vector.load %arg10[%c0_61, %c0_62] : memref<32x32xf32, #tpu.memory_space<vmem>>, vector<32x32xf32>
    %cst_63 = arith.constant dense<0.000000e+00> : vector<8x32xf32>
    %456 = tpu.matmul %454, %455, %cst_63 {dimension_numbers = #tpu.dot_dimension_numbers<[1], [0], [0], [1], [0, 0, 1, 1], [], []>} : vector<8x32xf32>, vector<32x32xf32>, vector<8x32xf32> -> vector<8x32xf32>
    %c0_64 = arith.constant 0 : index
    %c0_65 = arith.constant 0 : index
    %457 = vector.load %arg11[%c0_64, %c0_65] : memref<1x32xf32, #tpu.memory_space<vmem>>, vector<1x32xf32>
    %458 = vector.broadcast %457 : vector<1x32xf32> to vector<8x32xf32>
    %459 = arith.addf %456, %458 : vector<8x32xf32>
    %cst_66 = arith.constant dense<0.000000e+00> : vector<8xf32>
    %460 = vector.multi_reduction <add>, %459, %cst_66 [1] : vector<8x32xf32> to vector<8xf32>
    %461 = vector.shape_cast %460 : vector<8xf32> to vector<8x1xf32>
    %cst_67 = arith.constant 3.200000e+01 : f32
    %462 = vector.broadcast %cst_67 : f32 to vector<8x1xf32>
    %463 = arith.divf %461, %462 : vector<8x1xf32>
    %464 = vector.broadcast %463 : vector<8x1xf32> to vector<8x32xf32>
    %465 = arith.subf %459, %464 : vector<8x32xf32>
    %466 = arith.mulf %465, %465 : vector<8x32xf32>
    %cst_68 = arith.constant dense<0.000000e+00> : vector<8xf32>
    %467 = vector.multi_reduction <add>, %466, %cst_68 [1] : vector<8x32xf32> to vector<8xf32>
    %468 = vector.shape_cast %467 : vector<8xf32> to vector<8x1xf32>
    %cst_69 = arith.constant 3.200000e+01 : f32
    %469 = vector.broadcast %cst_69 : f32 to vector<8x1xf32>
    %470 = arith.divf %468, %469 : vector<8x1xf32>
    %471 = vector.broadcast %463 : vector<8x1xf32> to vector<8x32xf32>
    %472 = arith.subf %459, %471 : vector<8x32xf32>
    %cst_70 = arith.constant 9.99999974E-6 : f32
    %473 = vector.broadcast %cst_70 : f32 to vector<8x1xf32>
    %474 = arith.addf %470, %473 : vector<8x1xf32>
    %475 = math.rsqrt %474 : vector<8x1xf32>
    %476 = vector.broadcast %475 : vector<8x1xf32> to vector<8x32xf32>
    %477 = arith.mulf %472, %476 : vector<8x32xf32>
    %c0_71 = arith.constant 0 : index
    %c0_72 = arith.constant 0 : index
    %478 = vector.load %arg12[%c0_71, %c0_72] : memref<1x32xf32, #tpu.memory_space<vmem>>, vector<1x32xf32>
    %479 = vector.broadcast %478 : vector<1x32xf32> to vector<8x32xf32>
    %480 = arith.mulf %477, %479 : vector<8x32xf32>
    %c0_73 = arith.constant 0 : index
    %c0_74 = arith.constant 0 : index
    %481 = vector.load %arg13[%c0_73, %c0_74] : memref<1x32xf32, #tpu.memory_space<vmem>>, vector<1x32xf32>
    %482 = vector.broadcast %481 : vector<1x32xf32> to vector<8x32xf32>
    %483 = arith.addf %480, %482 : vector<8x32xf32>
    %c0_75 = arith.constant 0 : index
    %c0_76 = arith.constant 0 : index
    %484 = vector.load %arg14[%c0_75, %c0_76] : memref<8x32xf32, #tpu.memory_space<vmem>>, vector<8x32xf32>
    tpu.vector_store %arg14[%c0_75, %c0_76], %483 {strides = array<i32>} : memref<8x32xf32, #tpu.memory_space<vmem>>, vector<8x32xf32>,
    return
  }
}

</mosaic_0001>

<bundles_post_ra>
// kernel: tpu_custom_call.1
= control target key start
LH: loop header
LB: loop body
LE: loop exit
PB: predicated region body
PF: predicated region fallthrough
CT: control target
= control target key end

     0   :  { %vm65_vm0 = vcmask 130048   ;;  %v3464_v3 = vmov 0.0|0.0   ;;  %vm3465_vm1 = vmmov 0   ;;  %v3466_v10 = vmov 0.0   ;;  %s3467_s28 = smov 64   ;;  %s4134_s0 = inlined_call_operand.vmem [shape: f32[64,16], index: 0, kind: input, shape index: {}]   ;;  %s4135_s1 = inlined_call_operand.vmem [shape: f32[64,1], index: 1, kind: input, shape index: {}]   ;;  %s4136_s2 = inlined_call_operand.vmem [shape: f32[16,96], index: 2, kind: input, shape index: {}]   ;;  %s4137_s3 = inlined_call_operand.vmem [shape: f32[32,96], index: 3, kind: input, shape index: {}]   ;;  %s4138_s4 = inlined_call_operand.vmem [shape: f32[1,96], index: 4, kind: input, shape index: {}]   ;;  %s4139_s5 = inlined_call_operand.vmem [shape: f32[1,32], index: 5, kind: input, shape index: {}]   ;;  %s4140_s6 = inlined_call_operand.vmem [shape: f32[32,96], index: 6, kind: input, shape index: {}]   ;;  %s4141_s7 = inlined_call_operand.vmem [shape: f32[32,96], index: 7, kind: input, shape index: {}]   ;;  %s4142_s8 = inlined_call_operand.vmem [shape: f32[1,96], index: 8, kind: input, shape index: {}]   ;;  %s4143_s9 = inlined_call_operand.vmem [shape: f32[1,32], index: 9, kind: input, shape index: {}]   ;;  %s4144_s10 = inlined_call_operand.vmem [shape: f32[32,32], index: 10, kind: input, shape index: {}]   ;;  %s4145_s11 = inlined_call_operand.vmem [shape: f32[1,32], index: 11, kind: input, shape index: {}]   ;;  %s4146_s12 = inlined_call_operand.vmem [shape: f32[1,32], index: 12, kind: input, shape index: {}]   ;;  %s4147_s13 = inlined_call_operand.vmem [shape: f32[1,32], index: 13, kind: input, shape index: {}]   ;;  %s4148_s14 = inlined_call_operand.hbm [shape: f32[8,32], index: 14, kind: output, shape index: {}]  }
   0x1   :  { %v56_v0 = vld [vmem:[%s4136_s2] sm:$0xff]  ;;  %v57_v1 = vld [vmem:[%s4136_s2 + $0x8] sm:$0xff]  ;;  %3180 = vmatprep.subr.bf16.mxu1 %v3464_v3  ;;  %v197_v8 = vld [vmem:[%s4137_s3 + $0x10] sm:$0xff]  ;;  %2909 = vmatprep.mubr.msk.f32.mxu1 %vm3465_vm1, %v3466_v10 }
   0x2   :  { %v195_v2 = vld [vmem:[%s4137_s3] sm:$0xff]  ;;  %v3176_v4 = vpack.c.bf16 %v57_v1, %v56_v0  ;;  %v196_v5 = vld [vmem:[%s4137_s3 + $0x8] sm:$0xff]  ;;  %v198_v9 = vld [vmem:[%s4137_s3 + $0x18] sm:$0xff] }
   0x3   :  { %v48_v6 = vld [vmem:[%s4134_s0] sm:$0xff]  ;;  %v3563_v7 = vpack.c.bf16 %v196_v5, %v195_v2 }
   0x4   :  { %2889 = vmatprep.mubr.msk.f32.mxu0 %vm65_vm0, %v48_v6  ;;  %v2706_v11 = vld [vmem:[%s4139_s5] ss:$0 sm:$0xff]  ;;  %3177 = vmatprep.subr.bf16.mxu0 %v3176_v4 }
   0x5   :  { %304 = vrot.lane.b32.xlu0 %v2706_v11, %s3467_s28 }
   0x6   :  { %19 = vsyncpa [#allocation3], 0  ;;  %3182 = vmatpush3.bf16.msra.mxu1 %v3563_v7  ;;  %3179 = vmatpush3.bf16.msra.mxu0 %v3176_v4  ;;  %v49_v12 = vld [vmem:[%s4134_s0 + $0x8] sm:$0xff]  ;;  %v3582_v13 = vpack.c.bf16 %v198_v9, %v197_v8  ;;  %v3601_v20 = vld [vmem:[%s4138_s4] ss:$0 sm:$0xff]  ;;  %v3468_v30 = vmov 0  }
   0x7   :  { %3183 = vmatprep.subr.bf16.mxu1 %v3464_v3  ;;  %3192 = vmatprep.subr.bf16.mxu0 %v3464_v3  ;;  %v210_v29 = vld [vmem:[%s4135_s1] sm:$0xff]  ;;  %s3469_s17 = smov 96   ;;  %v50_v35 = vld [vmem:[%s4134_s0 + $0x10] sm:$0xff]  ;;  %v51_v36 = vld [vmem:[%s4134_s0 + $0x18] sm:$0xff]  ;;  %vm218_vm2 = vcmask 261120   ;;  %s3471_s16 = smov [#allocation2]  }
   0x8   :  { %3338 = vset.pattern.permute.xlu0 %v3468_v30  ;;  %3339 = vset.pattern.permute.xlu1 %v3468_v30  ;;  %v52_v37 = vld [vmem:[%s4134_s0 + $0x20] sm:$0xff]  ;;  %v205_v39 = vld [vmem:[%s4141_s7 + $0x8] sm:$0xff]  ;;  %v206_v42 = vld [vmem:[%s4141_s7 + $0x10] sm:$0xff]  ;;  %s2688_s18 = sshll.u32 %s3471_s16, 4  ;;  %s2689_s18 = int_to_ptr.vmem [resolvable:$true] %s2688_s18 }
   0x9   :  { %2890 = vmatmul.mubr.msk.f32.vlgmr.msra.gmra.mrb[0].mxu0 %vm65_vm0, %v49_v12  ;;  %v204_v38 = vld [vmem:[%s4141_s7] sm:$0xff]  ;;  %v53_v40 = vld [vmem:[%s4134_s0 + $0x28] sm:$0xff]  ;;  %v207_v43 = vld [vmem:[%s4141_s7 + $0x18] sm:$0xff]  ;;  %s3440_s19 = scalar_lea.vmem %s2689_s18, 128  ;;  %p3445_p1 = scmp.lt.s32.totalorder %s2689_s18, %s2689_s18 }
   0xa   :  { %3185 = vmatpush3.bf16.msra.mxu1 %v3582_v13  ;;  %2892 = vmatprep.mubr.msk.f32.mxu0 %vm65_vm0, %v50_v35  ;;  %v3629_v41 = vpack.c.bf16 %v205_v39, %v204_v38  ;;  %v200_v44 = vld [vmem:[%s4140_s6] sm:$0xff]  ;;  %v201_v45 = vld [vmem:[%s4140_s6 + $0x8] sm:$0xff]  ;;  %v54_v46 = vld [vmem:[%s4134_s0 + $0x30] sm:$0xff]  ;;  %v3648_v47 = vpack.c.bf16 %v207_v43, %v206_v42  ;;  %p3441_p0 = scmp.ne.s32.totalorder %s2689_s18, %s3440_s19  ;;  %p3446_p2 = scmp.lt.s32.totalorder %s3440_s19, %s3440_s19 }
   0xb   :  { %3186 = vmatprep.subr.bf16.mxu1 %v3464_v3  ;;  %v3650_v48 = vpack.c.bf16 %v201_v45, %v200_v44  ;;  %v202_v49 = vld [vmem:[%s4140_s6 + $0x10] sm:$0xff]  ;;  %v203_v50 = vld [vmem:[%s4140_s6 + $0x18] sm:$0xff]  ;;  %s3470_s6 = smov 32   ;;  %v2710_v57 = vld [vmem:[%s4143_s9] ss:$0 sm:$0xff] }
   0xc   :  { %3194 = vmatpush3.bf16.msra.mxu0 %v3629_v41  ;;  %v3661_v52 = vpack.c.bf16 %v203_v50, %v202_v49  ;;  %v55_v54 = vld [vmem:[%s4134_s0 + $0x38] sm:$0xff]  ;;  %v3727_v9 = vld [vmem:[%s4142_s8] ss:$0 sm:$0xff]  ;;  %v211_v44 = vld [vmem:[%s4135_s1 + $0x8] sm:$0xff]  ;;  %p3447_p3 = por %p3446_p2, %p3445_p1 }
   0xd   :  { %2910 = vmatmul.mubr.f32.vlgmr.msra.gmra.mrb[0].mxu1 %v3466_v10  ;;  %2893 = vmatmul.mubr.msk.f32.gmra.mrb[2].mxu0 %vm65_vm0, %v51_v36 }
   0xe   :  { %2920 = vmatprep.mubr.msk.f32.mxu1 %vm3465_vm1, %v3466_v10  ;;  %2895 = vmatprep.mubr.msk.f32.mxu0 %vm65_vm0, %v52_v37  ;;  %p3448_p4 = pnand %p3447_p3, %p3441_p0 }
   0xf   :  { %3195 = vmatprep.subr.bf16.mxu0 %v3464_v3  ;;  %3188 = vmatpush3.bf16.msra.mxu1 %v3650_v48 }
  0x10   :  { %3189 = vmatprep.subr.bf16.mxu1 %v3464_v3  ;;  %3197 = vmatpush3.bf16.msra.mxu0 %v3648_v47 }
  0x11   :  { %2896 = vmatmul.mubr.msk.f32.gmra.mrb[4].mxu0 %vm65_vm0, %v53_v40  ;;  %3204 = vmatprep.subr.bf16.mxu0 %v3464_v3 }
  0x12   :  { %2898 = vmatprep.mubr.msk.f32.mxu0 %vm65_vm0, %v54_v46 }
  0x13   :  { %3191 = vmatpush3.bf16.msra.mxu1 %v3661_v52 }
  0x14   :  { %3198 = vmatprep.subr.bf16.mxu1 %v3464_v3 }
  0x15   :  { %2899 = vmatmul.mubr.msk.f32.gmra.mrb[6].mxu0 %vm65_vm0, %v55_v54 }
  0x16   :  { %2931 = vmatprep.mubr.msk.f32.mxu0 %vm3465_vm1, %v3466_v10 }
  0x19   :  { %2932 = vmatmul.mubr.f32.vlgmr.msra.gmra.mrb[8].mxu0 %v3466_v10 }
  0x1a   :  { %3206 = vmatpush3.bf16.msra.mxu0 %v3650_v48  ;;  %2953 = vmatprep.mubr.msk.f32.mxu0 %vm3465_vm1, %v3466_v10 }
  0x1b   :  { %3207 = vmatprep.subr.bf16.mxu0 %v3464_v3 }
  0x1e   :  { %3209 = vmatpush3.bf16.msra.mxu0 %v3661_v52 }
  0x1f   :  { %3216 = vmatprep.subr.bf16.mxu0 %v3464_v3 }
  0x77   :  { %v3594_v16 = vpop.permute.xlu0 %304 }
  0xdc   :  { %v3592_v14 = vpop.f32.mrb[0].mxu0 }
  0xdd   :  { %v156_v15 = vpop.f32.mrb[1].mxu0 }
  0xde   :  { %v157_v21 = vadd.f32 %v3601_v20, %v156_v15 }
  0xe0   :  { %v288_v17 = vpop.f32.mrb[0].mxu1  ;;  %v3694_v60 = vpop.f32.mrb[2].mxu0 }
  0xe1   :  { %v307_v18 = vadd.f32 %v3594_v16, %v288_v17  ;;  %v2911_v19 = vpop.f32.mrb[1].mxu1  ;;  %v292_v22 = vadd.f32 %v288_v17, %v157_v21  ;;  %v3696_v61 = vpop.f32.mrb[3].mxu0 }
  0xe3   :  { %309 = vrot.lane.b32.xlu0 %v307_v18, %s3467_s28  ;;  %v2705_v23 = vmul.f32 -1.442695, %v292_v22 }
  0xe4   :  { %v3698_v62 = vpop.f32.mrb[4].mxu0 }
  0xe5   :  { %3340 = vpow2.f32 %v2705_v23  ;;  %v3700_v63 = vpop.f32.mrb[5].mxu0 }
  0xe7   :  { %332 = vperm.xlu0 %3338, %v210_v29  }
  0xe8   :  { %v3702_v0 = vpop.f32.mrb[6].mxu0 }
  0xe9   :  { %v3704_v1 = vpop.f32.mrb[7].mxu0 }
  0xeb   :  { %500 = vrot.lane.b32.xlu0 %v2710_v57, %s3467_s28 }
  0xec   :  { %v484_v2 = vpop.f32.mrb[8].mxu0 }
  0xed   :  { %v2933_v4 = vpop.f32.mrb[9].mxu0 }
  0xef   :  { %v3341_v24 = vpop.eup %3340 }
  0xf0   :  { %v296_v25 = vadd.f32 1.0, %v3341_v24 }
  0xf2   :  { %3342 = vrcp.f32 %v296_v25 }
  0xfc   :  { %v3343_v26 = vpop.eup %3342 }
 0x155   :  { %v310_v27 = vpop.permute.xlu0 %309 }
 0x156   :  { %v312_v28 = vmul.f32 %v3343_v26, %v310_v27 }
 0x158   :  { %314 = vrot.lane.b32.xlu1 %v312_v28, %s3467_s28  ;;  %v162_v28 = vadd.f32 %v3592_v14, %v3601_v20 }
 0x166   :  { %v3683_v56 = vpop.permute.xlu0 %332 }
 0x16a   :  { %v3706_v5 = vpop.permute.xlu0 %500 }
 0x16b   :  { %v503_v6 = vadd.f32 %v3706_v5, %v484_v2 }
 0x16d   :  { %505 = vrot.lane.b32.xlu0 %v503_v6, %s3467_s28 }
 0x1ca   :  { %v315_v31 = vpop.permute.xlu1 %314 }
 0x1cb   :  { %v317_v32 = vadd.f32 %v315_v31, %v157_v21 }
 0x1cd   :  { %3344 = vtanh.f32 %v317_v32 }
 0x1d7   :  { %v3345_v33 = vpop.eup %3344 }
 0x1d8   :  { %v319_v34 = vsub.f32 0.0, %v3345_v33 }
 0x1da   :  { %321 = vrot.lane.b32.xlu1 %v319_v34, %s3469_s17 }
 0x1df   :  { %v506_v25 = vpop.permute.xlu0 %505 }
 0x24c   :  { %v322_v51 = vpop.permute.xlu1 %321 }
 0x24d   :  { %v324_v53 = vmul.f32 %v3343_v26, %v322_v51 }
 0x24f   :  { %326 = vrot.lane.b32.xlu1 %v324_v53, %s3470_s6 }
 0x2c1   :  { %v327_v55 = vpop.permute.xlu1 %326 }
 0x2c2   :  { %v329_v58 = vadd.f32 %v3345_v33, %v327_v55 }
 0x2c4   :  { %v3690_v59 = vmul.f32 %v3683_v56, %v329_v58 }
 0x2c6   :  { %344 = vrot.lane.b32.xlu1 %v3690_v59, %s3467_s28 }
 0x338   :  { %v345_v8 = vpop.permute.xlu1 %344 }
 0x339   :  { %2921 = vmatmul.mubr.msk.f32.vlgmr.msra.gmra.mrb[2].mxu1 %vm218_vm2, %v345_v8 }
 0x33a   :  { %3200 = vmatpush3.bf16.msra.mxu1 %v3563_v7  ;;  %2942 = vmatprep.mubr.msk.f32.mxu1 %vm3465_vm1, %v3466_v10 }
 0x33b   :  { %3201 = vmatprep.subr.bf16.mxu1 %v3464_v3 }
 0x33e   :  { %3203 = vmatpush3.bf16.msra.mxu1 %v3582_v13 }
 0x33f   :  { %3210 = vmatprep.subr.bf16.mxu1 %v3464_v3 }
 0x341   :  { %2943 = vmatmul.mubr.msk.f32.vlgmr.msra.gmra.mrb[4].mxu1 %vm218_vm2, %v345_v8 }
 0x342   :  { %3212 = vmatpush3.bf16.msra.mxu1 %v3629_v41  ;;  %2964 = vmatprep.mubr.msk.f32.mxu1 %vm3465_vm1, %v3466_v10 }
 0x343   :  { %3213 = vmatprep.subr.bf16.mxu1 %v3464_v3 }
 0x346   :  { %3215 = vmatpush3.bf16.msra.mxu1 %v3648_v47 }
 0x347   :  { %3222 = vmatprep.subr.bf16.mxu1 %v3464_v3 }
 0x40c   :  { %v414_v11 = vpop.f32.mrb[2].mxu1 }
 0x40d   :  { %v415_v12 = vadd.f32 %v3727_v9, %v414_v11  ;;  %v2922_v15 = vpop.f32.mrb[3].mxu1 }
 0x40f   :  { %v488_v17 = vadd.f32 %v484_v2, %v415_v12 }
 0x411   :  { %v2709_v18 = vmul.f32 -1.442695, %v488_v17 }
 0x413   :  { %3346 = vpow2.f32 %v2709_v18 }
 0x414   :  { %v594_v19 = vpop.f32.mrb[4].mxu1 }
 0x415   :  { %v605_v21 = vadd.f32 %v594_v19, %v3594_v16  ;;  %v2944_v22 = vpop.f32.mrb[5].mxu1  ;;  %v598_v29 = vadd.f32 %v594_v19, %v162_v28 }
 0x417   :  { %607 = vrot.lane.b32.xlu1 %v605_v21, %s3467_s28  ;;  %v2712_v30 = vmul.f32 -1.442695, %v598_v29 }
 0x41d   :  { %v3347_v23 = vpop.eup %3346 }
 0x41e   :  { %v492_v24 = vadd.f32 1.0, %v3347_v23 }
 0x420   :  { %3348 = vrcp.f32 %v492_v24 }
 0x421   :  { %3350 = vpow2.f32 %v2712_v30  ;;  %v167_v30 = vadd.f32 %v3601_v20, %v3696_v61 }
 0x42a   :  { %v3349_v26 = vpop.eup %3348 }
 0x42b   :  { %v508_v27 = vmul.f32 %v3349_v26, %v506_v25  ;;  %v3351_v31 = vpop.eup %3350 }
 0x42c   :  { %v602_v32 = vadd.f32 1.0, %v3351_v31 }
 0x42d   :  { %510 = vrot.lane.b32.xlu0 %v508_v27, %s3467_s28 }
 0x42e   :  { %3352 = vrcp.f32 %v602_v32 }
 0x438   :  { %v3353_v33 = vpop.eup %3352 }
 0x489   :  { %v608_v34 = vpop.permute.xlu1 %607 }
 0x48a   :  { %v610_v35 = vmul.f32 %v3353_v33, %v608_v34 }
 0x48c   :  { %612 = vrot.lane.b32.xlu1 %v610_v35, %s3467_s28 }
 0x49f   :  { %v511_v36 = vpop.permute.xlu0 %510 }
 0x4a0   :  { %v513_v37 = vadd.f32 %v511_v36, %v415_v12 }
 0x4a2   :  { %3354 = vtanh.f32 %v513_v37 }
 0x4ac   :  { %v3355_v38 = vpop.eup %3354 }
 0x4ad   :  { %v515_v39 = vsub.f32 0.0, %v3355_v38 }
 0x4af   :  { %517 = vrot.lane.b32.xlu0 %v515_v39, %s3469_s17 }
 0x4fe   :  { %v613_v40 = vpop.permute.xlu1 %612 }
 0x4ff   :  { %v615_v14 = vadd.f32 %v613_v40, %v162_v28 }
 0x501   :  { %3356 = vtanh.f32 %v615_v14 }
 0x50b   :  { %v3357_v42 = vpop.eup %3356 }
 0x50c   :  { %v617_v43 = vsub.f32 %v3690_v59, %v3357_v42 }
 0x50e   :  { %619 = vrot.lane.b32.xlu1 %v617_v43, %s3469_s17 }
 0x512   :  { %631 = vperm.xlu1 %3339, %v211_v44  }
 0x521   :  { %v518_v45 = vpop.permute.xlu0 %517 }
 0x522   :  { %v520_v46 = vmul.f32 %v3349_v26, %v518_v45  ;;  %v212_v45 = vld [vmem:[%s4135_s1 + $0x10] sm:$0xff] }
 0x524   :  { %522 = vrot.lane.b32.xlu1 %v520_v46, %s3470_s6 }
 0x580   :  { %v620_v49 = vpop.permute.xlu1 %619 }
 0x581   :  { %v622_v50 = vmul.f32 %v3353_v33, %v620_v49 }
 0x583   :  { %624 = vrot.lane.b32.xlu0 %v622_v50, %s3470_s6 }
 0x591   :  { %v3744_v51 = vpop.permute.xlu1 %631 }
 0x596   :  { %v523_v53 = vpop.permute.xlu1 %522 }
 0x597   :  { %v525_v54 = vadd.f32 %v3355_v38, %v523_v53 }
 0x599   :  { %v3747_v55 = vmul.f32 %v525_v54, %v3683_v56 }
 0x59b   :  { %712 = vrot.lane.b32.xlu1 %v3747_v55, %s3467_s28 }
 0x5f5   :  { %v625_v57 = vpop.permute.xlu0 %624 }
 0x5f6   :  { %v627_v58 = vadd.f32 %v3357_v42, %v625_v57 }
 0x5f8   :  { %v628_v2 = vsub.f32 %v627_v58, %v3690_v59 }
 0x5fa   :  { %v634_v4 = vmul.f32 %v3744_v51, %v628_v2 }
 0x5fc   :  { %v3754_v6 = vadd.f32 %v634_v4, %v3690_v59 }
 0x5fe   :  { %637 = vrot.lane.b32.xlu0 %v3754_v6, %s3467_s28 }
 0x60d   :  { %v713_v8 = vpop.permute.xlu1 %712 }
 0x60e   :  { %2965 = vmatmul.mubr.msk.f32.vlgmr.msra.gmra.mrb[6].mxu1 %vm218_vm2, %v713_v8 }
 0x60f   :  { %3224 = vmatpush3.bf16.msra.mxu1 %v3650_v48  ;;  %2986 = vmatprep.mubr.msk.f32.mxu1 %vm3465_vm1, %v3466_v10 }
 0x610   :  { %3225 = vmatprep.subr.bf16.mxu1 %v3464_v3 }
 0x613   :  { %3227 = vmatpush3.bf16.msra.mxu1 %v3661_v52 }
 0x614   :  { %3234 = vmatprep.subr.bf16.mxu1 %v3464_v3 }
 0x670   :  { %v638_v56 = vpop.permute.xlu0 %637 }
 0x671   :  { %2954 = vmatmul.mubr.msk.f32.vlgmr.msra.gmra.mrb[10].mxu0 %vm218_vm2, %v638_v56 }
 0x672   :  { %3218 = vmatpush3.bf16.msra.mxu0 %v3563_v7  ;;  %2975 = vmatprep.mubr.msk.f32.mxu0 %vm3465_vm1, %v3466_v10 }
 0x673   :  { %3219 = vmatprep.subr.bf16.mxu0 %v3464_v3 }
 0x676   :  { %3221 = vmatpush3.bf16.msra.mxu0 %v3582_v13 }
 0x677   :  { %3228 = vmatprep.subr.bf16.mxu0 %v3464_v3 }
 0x679   :  { %2976 = vmatmul.mubr.msk.f32.vlgmr.msra.gmra.mrb[12].mxu0 %vm218_vm2, %v638_v56 }
 0x67a   :  { %3230 = vmatpush3.bf16.msra.mxu0 %v3629_v41  ;;  %2997 = vmatprep.mubr.msk.f32.mxu0 %vm3465_vm1, %v3466_v10 }
 0x67b   :  { %3231 = vmatprep.subr.bf16.mxu0 %v3464_v3 }
 0x67e   :  { %3233 = vmatpush3.bf16.msra.mxu0 %v3648_v47 }
 0x67f   :  { %3240 = vmatprep.subr.bf16.mxu0 %v3464_v3 }
 0x6e1   :  { %v782_v59 = vpop.f32.mrb[6].mxu1 }
 0x6e2   :  { %v793_v11 = vadd.f32 %v782_v59, %v3706_v5  ;;  %v2966_v12 = vpop.f32.mrb[7].mxu1 }
 0x6e4   :  { %795 = vrot.lane.b32.xlu1 %v793_v11, %s3467_s28 }
 0x744   :  { %v707_v15 = vpop.f32.mrb[10].mxu0 }
 0x745   :  { %v708_v17 = vadd.f32 %v3727_v9, %v707_v15  ;;  %v2955_v18 = vpop.f32.mrb[11].mxu0 }
 0x747   :  { %v786_v19 = vadd.f32 %v782_v59, %v708_v17 }
 0x749   :  { %v2715_v21 = vmul.f32 -1.442695, %v786_v19 }
 0x74b   :  { %3358 = vpow2.f32 %v2715_v21 }
 0x74c   :  { %v885_v22 = vpop.f32.mrb[12].mxu0 }
 0x74d   :  { %v896_v23 = vadd.f32 %v885_v22, %v3594_v16  ;;  %v2977_v24 = vpop.f32.mrb[13].mxu0  ;;  %v889_v31 = vadd.f32 %v885_v22, %v167_v30 }
 0x74f   :  { %898 = vrot.lane.b32.xlu0 %v896_v23, %s3467_s28  ;;  %v2717_v32 = vmul.f32 -1.442695, %v889_v31 }
 0x755   :  { %v3359_v25 = vpop.eup %3358 }
 0x756   :  { %v790_v26 = vadd.f32 1.0, %v3359_v25  ;;  %v796_v28 = vpop.permute.xlu1 %795 }
 0x758   :  { %3360 = vrcp.f32 %v790_v26 }
 0x759   :  { %3362 = vpow2.f32 %v2717_v32 }
 0x762   :  { %v3361_v27 = vpop.eup %3360 }
 0x763   :  { %v798_v29 = vmul.f32 %v3361_v27, %v796_v28  ;;  %v3363_v33 = vpop.eup %3362 }
 0x764   :  { %v893_v34 = vadd.f32 1.0, %v3363_v33  ;;  %v172_v33 = vadd.f32 %v3694_v60, %v3601_v20  ;;  %v213_v60 = vld [vmem:[%s4135_s1 + $0x18] sm:$0xff] }
 0x765   :  { %800 = vrot.lane.b32.xlu1 %v798_v29, %s3467_s28 }
 0x766   :  { %3364 = vrcp.f32 %v893_v34 }
 0x770   :  { %v3365_v35 = vpop.eup %3364 }
 0x7c1   :  { %v899_v36 = vpop.permute.xlu0 %898 }
 0x7c2   :  { %v901_v37 = vmul.f32 %v3365_v35, %v899_v36 }
 0x7c4   :  { %903 = vrot.lane.b32.xlu0 %v901_v37, %s3467_s28 }
 0x7d7   :  { %v801_v38 = vpop.permute.xlu1 %800 }
 0x7d8   :  { %v803_v39 = vadd.f32 %v801_v38, %v708_v17 }
 0x7da   :  { %3366 = vtanh.f32 %v803_v39 }
 0x7e4   :  { %v3367_v40 = vpop.eup %3366 }
 0x7e5   :  { %v805_v14 = vsub.f32 %v3747_v55, %v3367_v40 }
 0x7e7   :  { %807 = vrot.lane.b32.xlu1 %v805_v14, %s3469_s17 }
 0x836   :  { %v904_v61 = vpop.permute.xlu0 %903 }
 0x837   :  { %v906_v42 = vadd.f32 %v904_v61, %v167_v30 }
 0x839   :  { %3368 = vtanh.f32 %v906_v42 }
 0x843   :  { %v3369_v43 = vpop.eup %3368 }
 0x844   :  { %v908_v44 = vsub.f32 %v3754_v6, %v3369_v43 }
 0x846   :  { %910 = vrot.lane.b32.xlu0 %v908_v44, %s3469_s17 }
 0x84a   :  { %922 = vperm.xlu0 %3338, %v212_v45  }
 0x859   :  { %v808_v46 = vpop.permute.xlu1 %807 }
 0x85a   :  { %v810_v49 = vmul.f32 %v3361_v27, %v808_v46 }
 0x85c   :  { %812 = vrot.lane.b32.xlu0 %v810_v49, %s3470_s6 }
 0x8b8   :  { %v911_v50 = vpop.permute.xlu0 %910 }
 0x8b9   :  { %v913_v53 = vmul.f32 %v3365_v35, %v911_v50 }
 0x8bb   :  { %915 = vrot.lane.b32.xlu1 %v913_v53, %s3470_s6 }
 0x8c9   :  { %v3797_v54 = vpop.permute.xlu0 %922 }
 0x8ce   :  { %v813_v57 = vpop.permute.xlu0 %812 }
 0x8cf   :  { %v815_v58 = vadd.f32 %v3367_v40, %v813_v57 }
 0x8d1   :  { %v816_v2 = vsub.f32 %v815_v58, %v3747_v55 }
 0x8d3   :  { %v817_v4 = vmul.f32 %v816_v2, %v3744_v51 }
 0x8d5   :  { %v3802_v8 = vadd.f32 %v817_v4, %v3747_v55 }
 0x8d7   :  { %1003 = vrot.lane.b32.xlu0 %v3802_v8, %s3467_s28 }
 0x92d   :  { %v916_v56 = vpop.permute.xlu1 %915 }
 0x92e   :  { %v918_v59 = vadd.f32 %v3369_v43, %v916_v56 }
 0x930   :  { %v919_v11 = vsub.f32 %v918_v59, %v3754_v6 }
 0x932   :  { %v925_v12 = vmul.f32 %v3797_v54, %v919_v11 }
 0x934   :  { %v3809_v15 = vadd.f32 %v925_v12, %v3754_v6 }
 0x936   :  { %928 = vrot.lane.b32.xlu1 %v3809_v15, %s3467_s28 }
 0x949   :  { %v1004_v17 = vpop.permute.xlu0 %1003 }
 0x94a   :  { %2998 = vmatmul.mubr.msk.f32.vlgmr.msra.gmra.mrb[14].mxu0 %vm218_vm2, %v1004_v17 }
 0x94b   :  { %3242 = vmatpush3.bf16.msra.mxu0 %v3650_v48  ;;  %3019 = vmatprep.mubr.msk.f32.mxu0 %vm3465_vm1, %v3466_v10 }
 0x94c   :  { %3243 = vmatprep.subr.bf16.mxu0 %v3464_v3 }
 0x94f   :  { %3245 = vmatpush3.bf16.msra.mxu0 %v3661_v52 }
 0x950   :  { %3252 = vmatprep.subr.bf16.mxu0 %v3464_v3 }
 0x9a8   :  { %v929_v51 = vpop.permute.xlu1 %928 }
 0x9a9   :  { %2987 = vmatmul.mubr.msk.f32.vlgmr.msra.gmra.mrb[8].mxu1 %vm218_vm2, %v929_v51 }
 0x9aa   :  { %3236 = vmatpush3.bf16.msra.mxu1 %v3563_v7  ;;  %3008 = vmatprep.mubr.msk.f32.mxu1 %vm3465_vm1, %v3466_v10 }
 0x9ab   :  { %3237 = vmatprep.subr.bf16.mxu1 %v3464_v3 }
 0x9ae   :  { %3239 = vmatpush3.bf16.msra.mxu1 %v3582_v13 }
 0x9af   :  { %3246 = vmatprep.subr.bf16.mxu1 %v3464_v3 }
 0x9b1   :  { %3009 = vmatmul.mubr.msk.f32.vlgmr.msra.gmra.mrb[10].mxu1 %vm218_vm2, %v929_v51 }
 0x9b2   :  { %3248 = vmatpush3.bf16.msra.mxu1 %v3629_v41  ;;  %3030 = vmatprep.mubr.msk.f32.mxu1 %vm3465_vm1, %v3466_v10 }
 0x9b3   :  { %3249 = vmatprep.subr.bf16.mxu1 %v3464_v3 }
 0x9b6   :  { %3251 = vmatpush3.bf16.msra.mxu1 %v3648_v47 }
 0x9b7   :  { %3258 = vmatprep.subr.bf16.mxu1 %v3464_v3 }
 0xa1d   :  { %v1073_v55 = vpop.f32.mrb[14].mxu0 }
 0xa1e   :  { %v1084_v6 = vadd.f32 %v1073_v55, %v3706_v5  ;;  %v2999_v18 = vpop.f32.mrb[15].mxu0 }
 0xa20   :  { %1086 = vrot.lane.b32.xlu1 %v1084_v6, %s3467_s28 }
 0xa7c   :  { %v998_v19 = vpop.f32.mrb[8].mxu1 }
 0xa7d   :  { %v999_v21 = vadd.f32 %v3727_v9, %v998_v19  ;;  %v2988_v22 = vpop.f32.mrb[9].mxu1 }
 0xa7f   :  { %v1077_v23 = vadd.f32 %v1073_v55, %v999_v21 }
 0xa81   :  { %v2720_v24 = vmul.f32 -1.442695, %v1077_v23 }
 0xa83   :  { %3370 = vpow2.f32 %v2720_v24 }
 0xa84   :  { %v1176_v25 = vpop.f32.mrb[10].mxu1 }
 0xa85   :  { %v1187_v26 = vadd.f32 %v1176_v25, %v3594_v16  ;;  %v3010_v27 = vpop.f32.mrb[11].mxu1  ;;  %v1180_v34 = vadd.f32 %v1176_v25, %v172_v33 }
 0xa87   :  { %1189 = vrot.lane.b32.xlu0 %v1187_v26, %s3467_s28  ;;  %v2722_v35 = vmul.f32 -1.442695, %v1180_v34 }
 0xa8d   :  { %v3371_v28 = vpop.eup %3370 }
 0xa8e   :  { %v1081_v29 = vadd.f32 1.0, %v3371_v28 }
 0xa90   :  { %3372 = vrcp.f32 %v1081_v29 }
 0xa91   :  { %3374 = vpow2.f32 %v2722_v35  ;;  %v177_v35 = vadd.f32 %v3601_v20, %v3700_v63 }
 0xa92   :  { %v1087_v31 = vpop.permute.xlu1 %1086 }
 0xa9a   :  { %v3373_v30 = vpop.eup %3372 }
 0xa9b   :  { %v1089_v32 = vmul.f32 %v3373_v30, %v1087_v31  ;;  %v3375_v36 = vpop.eup %3374 }
 0xa9c   :  { %v1184_v37 = vadd.f32 1.0, %v3375_v36 }
 0xa9d   :  { %1091 = vrot.lane.b32.xlu1 %v1089_v32, %s3467_s28 }
 0xa9e   :  { %3376 = vrcp.f32 %v1184_v37 }
 0xaa8   :  { %v3377_v38 = vpop.eup %3376 }
 0xaf9   :  { %v1190_v39 = vpop.permute.xlu0 %1189 }
 0xafa   :  { %v1192_v40 = vmul.f32 %v3377_v38, %v1190_v39 }
 0xafc   :  { %1194 = vrot.lane.b32.xlu0 %v1192_v40, %s3467_s28 }
 0xb0f   :  { %v1092_v14 = vpop.permute.xlu1 %1091 }
 0xb10   :  { %v1094_v61 = vadd.f32 %v1092_v14, %v999_v21 }
 0xb12   :  { %3378 = vtanh.f32 %v1094_v61 }
 0xb1c   :  { %v3379_v42 = vpop.eup %3378 }
 0xb1d   :  { %v1096_v43 = vsub.f32 %v3802_v8, %v3379_v42 }
 0xb1f   :  { %1098 = vrot.lane.b32.xlu1 %v1096_v43, %s3469_s17 }
 0xb23   :  { %1213 = vperm.xlu1 %3339, %v213_v60  }
 0xb6e   :  { %v1195_v44 = vpop.permute.xlu0 %1194 }
 0xb6f   :  { %v1197_v45 = vadd.f32 %v1195_v44, %v172_v33 }
 0xb71   :  { %3380 = vtanh.f32 %v1197_v45 }
 0xb7b   :  { %v3381_v46 = vpop.eup %3380 }
 0xb7c   :  { %v1199_v49 = vsub.f32 %v3809_v15, %v3381_v46 }
 0xb7e   :  { %1201 = vrot.lane.b32.xlu0 %v1199_v49, %s3469_s17 }
 0xb91   :  { %v1099_v50 = vpop.permute.xlu1 %1098 }
 0xb92   :  { %v1101_v53 = vmul.f32 %v3373_v30, %v1099_v50  ;;  %v214_v50 = vld [vmem:[%s4135_s1 + $0x20] sm:$0xff] }
 0xb94   :  { %1103 = vrot.lane.b32.xlu0 %v1101_v53, %s3470_s6 }
 0xba2   :  { %v3859_v12 = vpop.permute.xlu1 %1213 }
 0xbf0   :  { %v1202_v57 = vpop.permute.xlu0 %1201 }
 0xbf1   :  { %v1204_v58 = vmul.f32 %v3377_v38, %v1202_v57 }
 0xbf3   :  { %1206 = vrot.lane.b32.xlu1 %v1204_v58, %s3470_s6 }
 0xc06   :  { %v1104_v2 = vpop.permute.xlu0 %1103 }
 0xc07   :  { %v1106_v4 = vadd.f32 %v3379_v42, %v1104_v2 }
 0xc09   :  { %v1107_v56 = vsub.f32 %v1106_v4, %v3802_v8 }
 0xc0b   :  { %v1108_v59 = vmul.f32 %v1107_v56, %v3797_v54 }
 0xc0d   :  { %v3855_v11 = vadd.f32 %v1108_v59, %v3802_v8 }
 0xc0f   :  { %1294 = vrot.lane.b32.xlu0 %v3855_v11, %s3467_s28 }
 0xc65   :  { %v1207_v17 = vpop.permute.xlu1 %1206 }
 0xc66   :  { %v1209_v51 = vadd.f32 %v3381_v46, %v1207_v17 }
 0xc68   :  { %v1210_v55 = vsub.f32 %v1209_v51, %v3809_v15 }
 0xc6a   :  { %v1216_v6 = vmul.f32 %v3859_v12, %v1210_v55 }
 0xc6c   :  { %v3864_v18 = vadd.f32 %v1216_v6, %v3809_v15 }
 0xc6e   :  { %1219 = vrot.lane.b32.xlu1 %v3864_v18, %s3467_s28 }
 0xc81   :  { %v1295_v54 = vpop.permute.xlu0 %1294 }
 0xc82   :  { %3031 = vmatmul.mubr.msk.f32.vlgmr.msra.gmra.mrb[12].mxu1 %vm218_vm2, %v1295_v54 }
 0xc83   :  { %3260 = vmatpush3.bf16.msra.mxu1 %v3650_v48  ;;  %3052 = vmatprep.mubr.msk.f32.mxu1 %vm3465_vm1, %v3466_v10 }
 0xc84   :  { %3261 = vmatprep.subr.bf16.mxu1 %v3464_v3 }
 0xc87   :  { %3263 = vmatpush3.bf16.msra.mxu1 %v3661_v52 }
 0xc88   :  { %3270 = vmatprep.subr.bf16.mxu1 %v3464_v3 }
 0xce0   :  { %v1220_v8 = vpop.permute.xlu1 %1219 }
 0xce1   :  { %3020 = vmatmul.mubr.msk.f32.vlgmr.msra.gmra.mrb[16].mxu0 %vm218_vm2, %v1220_v8 }
 0xce2   :  { %3254 = vmatpush3.bf16.msra.mxu0 %v3563_v7  ;;  %3041 = vmatprep.mubr.msk.f32.mxu0 %vm3465_vm1, %v3466_v10 }
 0xce3   :  { %3255 = vmatprep.subr.bf16.mxu0 %v3464_v3 }
 0xce6   :  { %3257 = vmatpush3.bf16.msra.mxu0 %v3582_v13 }
 0xce7   :  { %3264 = vmatprep.subr.bf16.mxu0 %v3464_v3 }
 0xce9   :  { %3042 = vmatmul.mubr.msk.f32.vlgmr.msra.gmra.mrb[18].mxu0 %vm218_vm2, %v1220_v8 }
 0xcea   :  { %3266 = vmatpush3.bf16.msra.mxu0 %v3629_v41  ;;  %3063 = vmatprep.mubr.msk.f32.mxu0 %vm3465_vm1, %v3466_v10 }
 0xceb   :  { %3267 = vmatprep.subr.bf16.mxu0 %v3464_v3 }
 0xcee   :  { %3269 = vmatpush3.bf16.msra.mxu0 %v3648_v47 }
 0xcef   :  { %3276 = vmatprep.subr.bf16.mxu0 %v3464_v3 }
 0xd55   :  { %v1364_v15 = vpop.f32.mrb[12].mxu1 }
 0xd56   :  { %v1375_v19 = vadd.f32 %v1364_v15, %v3706_v5  ;;  %v3032_v21 = vpop.f32.mrb[13].mxu1 }
 0xd58   :  { %1377 = vrot.lane.b32.xlu0 %v1375_v19, %s3467_s28 }
 0xdb4   :  { %v1289_v22 = vpop.f32.mrb[16].mxu0 }
 0xdb5   :  { %v1290_v23 = vadd.f32 %v3727_v9, %v1289_v22  ;;  %v3021_v24 = vpop.f32.mrb[17].mxu0 }
 0xdb7   :  { %v1368_v25 = vadd.f32 %v1364_v15, %v1290_v23 }
 0xdb9   :  { %v2725_v26 = vmul.f32 -1.442695, %v1368_v25 }
 0xdbb   :  { %3382 = vpow2.f32 %v2725_v26 }
 0xdbc   :  { %v1467_v27 = vpop.f32.mrb[18].mxu0 }
 0xdbd   :  { %v1478_v28 = vadd.f32 %v1467_v27, %v3594_v16  ;;  %v3043_v29 = vpop.f32.mrb[19].mxu0  ;;  %v1471_v36 = vadd.f32 %v1467_v27, %v177_v35 }
 0xdbf   :  { %1480 = vrot.lane.b32.xlu1 %v1478_v28, %s3467_s28  ;;  %v2727_v37 = vmul.f32 -1.442695, %v1471_v36  ;;  %v182_v36 = vadd.f32 %v3698_v62, %v3601_v20 }
 0xdc5   :  { %v3383_v30 = vpop.eup %3382 }
 0xdc6   :  { %v1372_v31 = vadd.f32 1.0, %v3383_v30 }
 0xdc8   :  { %3384 = vrcp.f32 %v1372_v31 }
 0xdc9   :  { %3386 = vpow2.f32 %v2727_v37 }
 0xdca   :  { %v1378_v33 = vpop.permute.xlu0 %1377 }
 0xdd2   :  { %v3385_v32 = vpop.eup %3384 }
 0xdd3   :  { %v1380_v34 = vmul.f32 %v3385_v32, %v1378_v33  ;;  %v3387_v38 = vpop.eup %3386 }
 0xdd4   :  { %v1475_v39 = vadd.f32 1.0, %v3387_v38 }
 0xdd5   :  { %1382 = vrot.lane.b32.xlu0 %v1380_v34, %s3467_s28 }
 0xdd6   :  { %3388 = vrcp.f32 %v1475_v39 }
 0xde0   :  { %v3389_v40 = vpop.eup %3388 }
 0xe31   :  { %v1481_v14 = vpop.permute.xlu1 %1480 }
 0xe32   :  { %v1483_v61 = vmul.f32 %v3389_v40, %v1481_v14 }
 0xe34   :  { %1485 = vrot.lane.b32.xlu1 %v1483_v61, %s3467_s28 }
 0xe47   :  { %v1383_v42 = vpop.permute.xlu0 %1382 }
 0xe48   :  { %v1385_v43 = vadd.f32 %v1383_v42, %v1290_v23 }
 0xe4a   :  { %3390 = vtanh.f32 %v1385_v43 }
 0xe54   :  { %v3391_v60 = vpop.eup %3390 }
 0xe55   :  { %v1387_v44 = vsub.f32 %v3855_v11, %v3391_v60 }
 0xe57   :  { %1389 = vrot.lane.b32.xlu0 %v1387_v44, %s3469_s17 }
 0xea6   :  { %v1486_v63 = vpop.permute.xlu1 %1485 }
 0xea7   :  { %v1488_v45 = vadd.f32 %v1486_v63, %v177_v35 }
 0xea9   :  { %3392 = vtanh.f32 %v1488_v45 }
 0xeb3   :  { %v3393_v46 = vpop.eup %3392 }
 0xeb4   :  { %v1490_v49 = vsub.f32 %v3864_v18, %v3393_v46 }
 0xeb6   :  { %1492 = vrot.lane.b32.xlu1 %v1490_v49, %s3469_s17  ;;  %v215_v49 = vld [vmem:[%s4135_s1 + $0x28] sm:$0xff] }
 0xeba   :  { %1504 = vperm.xlu1 %3339, %v214_v50  }
 0xec9   :  { %v1390_v53 = vpop.permute.xlu0 %1389 }
 0xeca   :  { %v1392_v57 = vmul.f32 %v3385_v32, %v1390_v53 }
 0xecc   :  { %1394 = vrot.lane.b32.xlu0 %v1392_v57, %s3470_s6 }
 0xf28   :  { %v1493_v58 = vpop.permute.xlu1 %1492 }
 0xf29   :  { %v1495_v2 = vmul.f32 %v3389_v40, %v1493_v58 }
 0xf2b   :  { %1497 = vrot.lane.b32.xlu0 %v1495_v2, %s3470_s6 }
 0xf39   :  { %v3915_v8 = vpop.permute.xlu1 %1504 }
 0xf3e   :  { %v1395_v4 = vpop.permute.xlu0 %1394 }
 0xf3f   :  { %v1397_v56 = vadd.f32 %v3391_v60, %v1395_v4 }
 0xf41   :  { %v1398_v59 = vsub.f32 %v1397_v56, %v3855_v11 }
 0xf43   :  { %v1399_v17 = vmul.f32 %v1398_v59, %v3859_v12 }
 0xf45   :  { %v3910_v51 = vadd.f32 %v1399_v17, %v3855_v11 }
 0xf47   :  { %1585 = vrot.lane.b32.xlu1 %v3910_v51, %s3467_s28 }
 0xf9d   :  { %v1498_v55 = vpop.permute.xlu0 %1497 }
 0xf9e   :  { %v1500_v6 = vadd.f32 %v3393_v46, %v1498_v55 }
 0xfa0   :  { %v1501_v54 = vsub.f32 %v1500_v6, %v3864_v18 }
 0xfa2   :  { %v1507_v15 = vmul.f32 %v3915_v8, %v1501_v54 }
 0xfa4   :  { %v3919_v19 = vadd.f32 %v1507_v15, %v3864_v18 }
 0xfa6   :  { %1510 = vrot.lane.b32.xlu0 %v3919_v19, %s3467_s28 }
 0xfb9   :  { %v1586_v12 = vpop.permute.xlu1 %1585 }
 0xfba   :  { %3064 = vmatmul.mubr.msk.f32.vlgmr.msra.gmra.mrb[20].mxu0 %vm218_vm2, %v1586_v12 }
 0xfbb   :  { %3278 = vmatpush3.bf16.msra.mxu0 %v3650_v48  ;;  %3085 = vmatprep.mubr.msk.f32.mxu0 %vm3465_vm1, %v3466_v10 }
 0xfbc   :  { %3279 = vmatprep.subr.bf16.mxu0 %v3464_v3 }
 0xfbf   :  { %3281 = vmatpush3.bf16.msra.mxu0 %v3661_v52 }
 0xfc0   :  { %3288 = vmatprep.subr.bf16.mxu0 %v3464_v3 }
0x1018   :  { %v1511_v11 = vpop.permute.xlu0 %1510 }
0x1019   :  { %3053 = vmatmul.mubr.msk.f32.vlgmr.msra.gmra.mrb[14].mxu1 %vm218_vm2, %v1511_v11 }
0x101a   :  { %3272 = vmatpush3.bf16.msra.mxu1 %v3563_v7  ;;  %3074 = vmatprep.mubr.msk.f32.mxu1 %vm3465_vm1, %v3466_v10 }
0x101b   :  { %3273 = vmatprep.subr.bf16.mxu1 %v3464_v3 }
0x101e   :  { %3275 = vmatpush3.bf16.msra.mxu1 %v3582_v13 }
0x101f   :  { %3282 = vmatprep.subr.bf16.mxu1 %v3464_v3 }
0x1021   :  { %3075 = vmatmul.mubr.msk.f32.vlgmr.msra.gmra.mrb[16].mxu1 %vm218_vm2, %v1511_v11 }
0x1022   :  { %3284 = vmatpush3.bf16.msra.mxu1 %v3629_v41  ;;  %3096 = vmatprep.mubr.msk.f32.mxu1 %vm3465_vm1, %v3466_v10 }
0x1023   :  { %3285 = vmatprep.subr.bf16.mxu1 %v3464_v3 }
0x1026   :  { %3287 = vmatpush3.bf16.msra.mxu1 %v3648_v47 }
0x1027   :  { %3294 = vmatprep.subr.bf16.mxu1 %v3464_v3 }
0x108d   :  { %v1655_v18 = vpop.f32.mrb[20].mxu0 }
0x108e   :  { %v1666_v21 = vadd.f32 %v1655_v18, %v3706_v5  ;;  %v3065_v22 = vpop.f32.mrb[21].mxu0 }
0x1090   :  { %1668 = vrot.lane.b32.xlu1 %v1666_v21, %s3467_s28 }
0x10ec   :  { %v1580_v23 = vpop.f32.mrb[14].mxu1 }
0x10ed   :  { %v1581_v24 = vadd.f32 %v3727_v9, %v1580_v23  ;;  %v3054_v25 = vpop.f32.mrb[15].mxu1 }
0x10ef   :  { %v1659_v26 = vadd.f32 %v1655_v18, %v1581_v24 }
0x10f1   :  { %v2730_v27 = vmul.f32 -1.442695, %v1659_v26 }
0x10f3   :  { %3394 = vpow2.f32 %v2730_v27 }
0x10f4   :  { %v1758_v28 = vpop.f32.mrb[16].mxu1 }
0x10f5   :  { %v1769_v29 = vadd.f32 %v1758_v28, %v3594_v16  ;;  %v3076_v30 = vpop.f32.mrb[17].mxu1  ;;  %v1762_v37 = vadd.f32 %v1758_v28, %v182_v36 }
0x10f7   :  { %1771 = vrot.lane.b32.xlu0 %v1769_v29, %s3467_s28  ;;  %v2732_v38 = vmul.f32 -1.442695, %v1762_v37 }
0x10fd   :  { %v3395_v31 = vpop.eup %3394 }
0x10fe   :  { %v1663_v32 = vadd.f32 1.0, %v3395_v31 }
0x1100   :  { %3396 = vrcp.f32 %v1663_v32 }
0x1101   :  { %3398 = vpow2.f32 %v2732_v38 }
0x1102   :  { %v1669_v34 = vpop.permute.xlu1 %1668 }
0x110a   :  { %v3397_v33 = vpop.eup %3396 }
0x110b   :  { %v1671_v35 = vmul.f32 %v3397_v33, %v1669_v34  ;;  %v3399_v39 = vpop.eup %3398 }
0x110c   :  { %v1766_v40 = vadd.f32 1.0, %v3399_v39 }
0x110d   :  { %1673 = vrot.lane.b32.xlu1 %v1671_v35, %s3467_s28  ;;  %v4008_v35 = vld [vmem:[%s4138_s4] ss:$0 sm:$0xff] }
0x110e   :  { %3400 = vrcp.f32 %v1766_v40 }
0x1118   :  { %v3401_v14 = vpop.eup %3400 }
0x1169   :  { %v1772_v61 = vpop.permute.xlu0 %1771 }
0x116a   :  { %v1774_v42 = vmul.f32 %v3401_v14, %v1772_v61 }
0x116c   :  { %1776 = vrot.lane.b32.xlu0 %v1774_v42, %s3467_s28 }
0x117f   :  { %v1674_v43 = vpop.permute.xlu1 %1673 }
0x1180   :  { %v1676_v60 = vadd.f32 %v1674_v43, %v1581_v24 }
0x1182   :  { %3402 = vtanh.f32 %v1676_v60 }
0x118c   :  { %v3403_v44 = vpop.eup %3402 }
0x118d   :  { %v1678_v63 = vsub.f32 %v3910_v51, %v3403_v44 }
0x118f   :  { %1680 = vrot.lane.b32.xlu1 %v1678_v63, %s3469_s17 }
0x11de   :  { %v1777_v20 = vpop.permute.xlu0 %1776 }
0x11df   :  { %v1779_v62 = vadd.f32 %v1777_v20, %v182_v36  ;;  %v187_v36 = vadd.f32 %v4008_v35, %v3704_v1 }
0x11e1   :  { %3404 = vtanh.f32 %v1779_v62 }
0x11eb   :  { %v3405_v45 = vpop.eup %3404 }
0x11ec   :  { %v1781_v46 = vsub.f32 %v3919_v19, %v3405_v45 }
0x11ee   :  { %1783 = vrot.lane.b32.xlu0 %v1781_v46, %s3469_s17  ;;  %v216_v46 = vld [vmem:[%s4135_s1 + $0x30] sm:$0xff] }
0x11f2   :  { %1795 = vperm.xlu0 %3338, %v215_v49  }
0x1201   :  { %v1681_v50 = vpop.permute.xlu1 %1680 }
0x1202   :  { %v1683_v53 = vmul.f32 %v3397_v33, %v1681_v50 }
0x1204   :  { %1685 = vrot.lane.b32.xlu1 %v1683_v53, %s3470_s6 }
0x1260   :  { %v1784_v57 = vpop.permute.xlu0 %1783 }
0x1261   :  { %v1786_v58 = vmul.f32 %v3401_v14, %v1784_v57 }
0x1263   :  { %1788 = vrot.lane.b32.xlu1 %v1786_v58, %s3470_s6 }
0x1271   :  { %v3970_v15 = vpop.permute.xlu0 %1795 }
0x1276   :  { %v1686_v2 = vpop.permute.xlu1 %1685 }
0x1277   :  { %v1688_v4 = vadd.f32 %v3403_v44, %v1686_v2 }
0x1279   :  { %v1689_v56 = vsub.f32 %v1688_v4, %v3910_v51 }
0x127b   :  { %v1690_v59 = vmul.f32 %v1689_v56, %v3915_v8 }
0x127d   :  { %v3965_v17 = vadd.f32 %v1690_v59, %v3910_v51 }
0x127f   :  { %1876 = vrot.lane.b32.xlu0 %v3965_v17, %s3467_s28 }
0x12d5   :  { %v1789_v55 = vpop.permute.xlu1 %1788 }
0x12d6   :  { %v1791_v6 = vadd.f32 %v3405_v45, %v1789_v55 }
0x12d8   :  { %v1792_v54 = vsub.f32 %v1791_v6, %v3919_v19 }
0x12da   :  { %v1798_v12 = vmul.f32 %v3970_v15, %v1792_v54 }
0x12dc   :  { %v3974_v11 = vadd.f32 %v1798_v12, %v3919_v19 }
0x12de   :  { %1801 = vrot.lane.b32.xlu1 %v3974_v11, %s3467_s28 }
0x12f1   :  { %v1877_v8 = vpop.permute.xlu0 %1876 }
0x12f2   :  { %3097 = vmatmul.mubr.msk.f32.vlgmr.msra.gmra.mrb[18].mxu1 %vm218_vm2, %v1877_v8 }
0x12f3   :  { %3296 = vmatpush3.bf16.msra.mxu1 %v3650_v48  ;;  %3118 = vmatprep.mubr.msk.f32.mxu1 %vm3465_vm1, %v3466_v10 }
0x12f4   :  { %3297 = vmatprep.subr.bf16.mxu1 %v3464_v3 }
0x12f7   :  { %3299 = vmatpush3.bf16.msra.mxu1 %v3661_v52 }
0x12f8   :  { %3306 = vmatprep.subr.bf16.mxu1 %v3464_v3 }
0x1350   :  { %v1802_v51 = vpop.permute.xlu1 %1801 }
0x1351   :  { %3086 = vmatmul.mubr.msk.f32.vlgmr.msra.gmra.mrb[22].mxu0 %vm218_vm2, %v1802_v51 }
0x1352   :  { %3290 = vmatpush3.bf16.msra.mxu0 %v3563_v7  ;;  %3107 = vmatprep.mubr.msk.f32.mxu0 %vm3465_vm1, %v3466_v10 }
0x1353   :  { %3291 = vmatprep.subr.bf16.mxu0 %v3464_v3 }
0x1356   :  { %3293 = vmatpush3.bf16.msra.mxu0 %v3582_v13 }
0x1357   :  { %3300 = vmatprep.subr.bf16.mxu0 %v3464_v3 }
0x1359   :  { %3108 = vmatmul.mubr.msk.f32.vlgmr.msra.gmra.mrb[24].mxu0 %vm218_vm2, %v1802_v51 }
0x135a   :  { %3302 = vmatpush3.bf16.msra.mxu0 %v3629_v41  ;;  %3129 = vmatprep.mubr.msk.f32.mxu0 %vm3465_vm1, %v3466_v10 }
0x135b   :  { %3303 = vmatprep.subr.bf16.mxu0 %v3464_v3 }
0x135e   :  { %3305 = vmatpush3.bf16.msra.mxu0 %v3648_v47 }
0x135f   :  { %3312 = vmatprep.subr.bf16.mxu0 %v3464_v3 }
0x13c5   :  { %v1946_v19 = vpop.f32.mrb[18].mxu1 }
0x13c6   :  { %v1957_v18 = vadd.f32 %v1946_v19, %v3706_v5  ;;  %v3098_v21 = vpop.f32.mrb[19].mxu1 }
0x13c8   :  { %1959 = vrot.lane.b32.xlu0 %v1957_v18, %s3467_s28 }
0x1424   :  { %v1871_v22 = vpop.f32.mrb[22].mxu0 }
0x1425   :  { %v1872_v23 = vadd.f32 %v3727_v9, %v1871_v22  ;;  %v3087_v24 = vpop.f32.mrb[23].mxu0 }
0x1427   :  { %v1950_v25 = vadd.f32 %v1946_v19, %v1872_v23 }
0x1429   :  { %v2735_v26 = vmul.f32 -1.442695, %v1950_v25 }
0x142b   :  { %3406 = vpow2.f32 %v2735_v26 }
0x142c   :  { %v2049_v27 = vpop.f32.mrb[24].mxu0 }
0x142d   :  { %v2060_v28 = vadd.f32 %v2049_v27, %v3594_v16  ;;  %v3109_v29 = vpop.f32.mrb[25].mxu0  ;;  %v2053_v37 = vadd.f32 %v2049_v27, %v187_v36 }
0x142f   :  { %2062 = vrot.lane.b32.xlu1 %v2060_v28, %s3467_s28  ;;  %v2737_v38 = vmul.f32 -1.442695, %v2053_v37 }
0x1435   :  { %v3407_v30 = vpop.eup %3406 }
0x1436   :  { %v1954_v31 = vadd.f32 1.0, %v3407_v30 }
0x1438   :  { %3408 = vrcp.f32 %v1954_v31 }
0x1439   :  { %3410 = vpow2.f32 %v2737_v38 }
0x143a   :  { %v1960_v33 = vpop.permute.xlu0 %1959 }
0x1442   :  { %v3409_v32 = vpop.eup %3408 }
0x1443   :  { %v1962_v34 = vmul.f32 %v3409_v32, %v1960_v33  ;;  %v3411_v39 = vpop.eup %3410 }
0x1444   :  { %v2057_v40 = vadd.f32 1.0, %v3411_v39 }
0x1445   :  { %1964 = vrot.lane.b32.xlu0 %v1962_v34, %s3467_s28 }
0x1446   :  { %3412 = vrcp.f32 %v2057_v40 }
0x1450   :  { %v3413_v14 = vpop.eup %3412 }
0x14a1   :  { %v2063_v61 = vpop.permute.xlu1 %2062 }
0x14a2   :  { %v2065_v42 = vmul.f32 %v3413_v14, %v2063_v61 }
0x14a4   :  { %2067 = vrot.lane.b32.xlu1 %v2065_v42, %s3467_s28 }
0x14b7   :  { %v1965_v43 = vpop.permute.xlu0 %1964 }
0x14b8   :  { %v1967_v60 = vadd.f32 %v1965_v43, %v1872_v23 }
0x14ba   :  { %3414 = vtanh.f32 %v1967_v60 }
0x14c4   :  { %v3415_v44 = vpop.eup %3414 }
0x14c5   :  { %v1969_v63 = vsub.f32 %v3965_v17, %v3415_v44 }
0x14c7   :  { %1971 = vrot.lane.b32.xlu0 %v1969_v63, %s3469_s17 }
0x1516   :  { %v2068_v1 = vpop.permute.xlu1 %2067 }
0x1517   :  { %v2070_v20 = vadd.f32 %v2068_v1, %v187_v36 }
0x1519   :  { %3416 = vtanh.f32 %v2070_v20 }
0x1523   :  { %v3417_v62 = vpop.eup %3416 }
0x1524   :  { %v2072_v45 = vsub.f32 %v3974_v11, %v3417_v62 }
0x1526   :  { %2074 = vrot.lane.b32.xlu1 %v2072_v45, %s3469_s17 }
0x152a   :  { %2086 = vperm.xlu1 %3339, %v216_v46  }
0x1539   :  { %v1972_v49 = vpop.permute.xlu0 %1971 }
0x153a   :  { %v1974_v50 = vmul.f32 %v3409_v32, %v1972_v49 }
0x153c   :  { %1976 = vrot.lane.b32.xlu0 %v1974_v50, %s3470_s6 }
0x1598   :  { %v2075_v53 = vpop.permute.xlu1 %2074 }
0x1599   :  { %v2077_v57 = vmul.f32 %v3413_v14, %v2075_v53  ;;  %v217_v14 = vld [vmem:[%s4135_s1 + $0x38] sm:$0xff] }
0x159b   :  { %2079 = vrot.lane.b32.xlu0 %v2077_v57, %s3470_s6 }
0x15a9   :  { %v4030_v12 = vpop.permute.xlu1 %2086 }
0x15ae   :  { %v1977_v58 = vpop.permute.xlu0 %1976 }
0x15af   :  { %v1979_v2 = vadd.f32 %v3415_v44, %v1977_v58 }
0x15b1   :  { %v1980_v4 = vsub.f32 %v1979_v2, %v3965_v17 }
0x15b3   :  { %v1981_v56 = vmul.f32 %v1980_v4, %v3970_v15 }
0x15b5   :  { %v4025_v59 = vadd.f32 %v1981_v56, %v3965_v17 }
0x15b7   :  { %2167 = vrot.lane.b32.xlu1 %v4025_v59, %s3467_s28 }
0x160d   :  { %v2080_v55 = vpop.permute.xlu0 %2079 }
0x160e   :  { %v2082_v6 = vadd.f32 %v3417_v62, %v2080_v55 }
0x1610   :  { %v2083_v54 = vsub.f32 %v2082_v6, %v3974_v11  ;;  %v3439_v6 = vld [vmem:[%s4142_s8] ss:$0 sm:$0xff] }
0x1612   :  { %v2089_v8 = vmul.f32 %v4030_v12, %v2083_v54 }
0x1614   :  { %v4034_v51 = vadd.f32 %v2089_v8, %v3974_v11 }
0x1616   :  { %2092 = vrot.lane.b32.xlu0 %v4034_v51, %s3467_s28 }
0x1629   :  { %v2168_v15 = vpop.permute.xlu1 %2167 }
0x162a   :  { %3130 = vmatmul.mubr.msk.f32.vlgmr.msra.gmra.mrb[26].mxu0 %vm218_vm2, %v2168_v15 }
0x162b   :  { %3314 = vmatpush3.bf16.msra.mxu0 %v3650_v48  ;;  %3151 = vmatprep.mubr.msk.f32.mxu0 %vm3465_vm1, %v3466_v10 }
0x162c   :  { %3315 = vmatprep.subr.bf16.mxu0 %v3464_v3 }
0x162f   :  { %3317 = vmatpush3.bf16.msra.mxu0 %v3661_v52 }
0x1630   :  { %3324 = vmatprep.subr.bf16.mxu0 %v3464_v3 }
0x1688   :  { %v2093_v17 = vpop.permute.xlu0 %2092 }
0x1689   :  { %3119 = vmatmul.mubr.msk.f32.vlgmr.msra.gmra.mrb[20].mxu1 %vm218_vm2, %v2093_v17 }
0x168a   :  { %3308 = vmatpush3.bf16.msra.mxu1 %v3563_v7  ;;  %3140 = vmatprep.mubr.msk.f32.mxu1 %vm3465_vm1, %v3466_v10 }
0x168b   :  { %3309 = vmatprep.subr.bf16.mxu1 %v3464_v3 }
0x168e   :  { %3311 = vmatpush3.bf16.msra.mxu1 %v3582_v13 }
0x168f   :  { %3318 = vmatprep.subr.bf16.mxu1 %v3464_v3 }
0x1691   :  { %3141 = vmatmul.mubr.msk.f32.vlgmr.msra.gmra.mrb[22].mxu1 %vm218_vm2, %v2093_v17 }
0x1692   :  { %3320 = vmatpush3.bf16.msra.mxu1 %v3629_v41  ;;  %3162 = vmatprep.mubr.msk.f32.mxu1 %vm3465_vm1, %v3466_v10 }
0x1693   :  { %3321 = vmatprep.subr.bf16.mxu1 %v3464_v3 }
0x1696   :  { %3323 = vmatpush3.bf16.msra.mxu1 %v3648_v47 }
0x16fd   :  { %v2237_v7 = vpop.f32.mrb[26].mxu0 }
0x16fe   :  { %v2248_v48 = vadd.f32 %v2237_v7, %v3706_v5  ;;  %v3131_v52 = vpop.f32.mrb[27].mxu0 }
0x1700   :  { %2250 = vrot.lane.b32.xlu1 %v2248_v48, %s3467_s28 }
0x175c   :  { %v2162_v13 = vpop.f32.mrb[20].mxu1 }
0x175d   :  { %v2163_v11 = vadd.f32 %v3727_v9, %v2162_v13  ;;  %v3120_v19 = vpop.f32.mrb[21].mxu1  ;;  %v192_v9 = vadd.f32 %v4008_v35, %v3702_v0 }
0x175e   :  { %v2565_v19 = vld [vmem:[%s4144_s10] sm:$0xff] }
0x175f   :  { %v2241_v18 = vadd.f32 %v2237_v7, %v2163_v11 }
0x1761   :  { %v2740_v21 = vmul.f32 -1.442695, %v2241_v18  ;;  %v2566_v18 = vld [vmem:[%s4144_s10 + $0x8] sm:$0xff] }
0x1763   :  { %3418 = vpow2.f32 %v2740_v21  ;;  %v2567_v21 = vld [vmem:[%s4144_s10 + $0x10] sm:$0xff] }
0x1764   :  { %v2340_v41 = vpop.f32.mrb[22].mxu1 }
0x1765   :  { %v2351_v22 = vadd.f32 %v2340_v41, %v3594_v16  ;;  %v3142_v23 = vpop.f32.mrb[23].mxu1  ;;  %v2344_v28 = vadd.f32 %v2340_v41, %v192_v9  ;;  %v3325_v41 = vpack.c.bf16 %v2566_v18, %v2565_v19 }
0x1767   :  { %2353 = vrot.lane.b32.xlu0 %v2351_v22, %s3467_s28  ;;  %v2742_v29 = vmul.f32 -1.442695, %v2344_v28  ;;  %v2568_v22 = vld [vmem:[%s4144_s10 + $0x18] sm:$0xff] }
0x176d   :  { %v3419_v47 = vpop.eup %3418 }
0x176e   :  { %v2245_v24 = vadd.f32 1.0, %v3419_v47 }
0x1770   :  { %3420 = vrcp.f32 %v2245_v24  ;;  %v3328_v24 = vpack.c.bf16 %v2568_v22, %v2567_v21 }
0x1771   :  { %3422 = vpow2.f32 %v2742_v29 }
0x1772   :  { %v2251_v26 = vpop.permute.xlu1 %2250 }
0x177a   :  { %v3421_v25 = vpop.eup %3420 }
0x177b   :  { %v2253_v27 = vmul.f32 %v3421_v25, %v2251_v26  ;;  %v3423_v30 = vpop.eup %3422 }
0x177c   :  { %v2348_v31 = vadd.f32 1.0, %v3423_v30  ;;  %v2746_v30 = vld [vmem:[%s4145_s11] ss:$0 sm:$0xff] }
0x177d   :  { %2255 = vrot.lane.b32.xlu1 %v2253_v27, %s3467_s28 }
0x177e   :  { %3424 = vrcp.f32 %v2348_v31 }
0x1788   :  { %v3425_v16 = vpop.eup %3424 }
0x17d9   :  { %v2354_v32 = vpop.permute.xlu0 %2353 }
0x17da   :  { %v2356_v33 = vmul.f32 %v3425_v16, %v2354_v32 }
0x17dc   :  { %2358 = vrot.lane.b32.xlu0 %v2356_v33, %s3467_s28 }
0x17ef   :  { %v2256_v34 = vpop.permute.xlu1 %2255 }
0x17f0   :  { %v2258_v36 = vadd.f32 %v2256_v34, %v2163_v11 }
0x17f2   :  { %3426 = vtanh.f32 %v2258_v36 }
0x17fc   :  { %v3427_v37 = vpop.eup %3426 }
0x17fd   :  { %v2260_v38 = vsub.f32 %v4025_v59, %v3427_v37 }
0x17ff   :  { %2262 = vrot.lane.b32.xlu1 %v2260_v38, %s3469_s17 }
0x184e   :  { %v2359_v0 = vpop.permute.xlu0 %2358 }
0x184f   :  { %v2361_v35 = vadd.f32 %v2359_v0, %v192_v9 }
0x1851   :  { %3428 = vtanh.f32 %v2361_v35 }
0x185b   :  { %v3429_v39 = vpop.eup %3428 }
0x185c   :  { %v2363_v40 = vsub.f32 %v4034_v51, %v3429_v39 }
0x185e   :  { %2365 = vrot.lane.b32.xlu0 %v2363_v40, %s3469_s17 }
0x1862   :  { %2377 = vperm.xlu0 %3338, %v217_v14   ;;  %v2748_v14 = vld [vmem:[%s4146_s12] ss:$0 sm:$0xff] }
0x1871   :  { %v2263_v61 = vpop.permute.xlu1 %2262 }
0x1872   :  { %v2265_v42 = vmul.f32 %v3421_v25, %v2263_v61 }
0x1874   :  { %2267 = vrot.lane.b32.xlu1 %v2265_v42, %s3470_s6  ;;  %v2749_v42 = vld [vmem:[%s4147_s13] ss:$0 sm:$0xff] }
0x18d0   :  { %v2366_v43 = vpop.permute.xlu0 %2365 }
0x18d1   :  { %v2368_v60 = vmul.f32 %v3425_v16, %v2366_v43 }
0x18d3   :  { %2370 = vrot.lane.b32.xlu1 %v2368_v60, %s3470_s6 }
0x18e1   :  { %v2378_v50 = vpop.permute.xlu0 %2377 }
0x18e6   :  { %v2268_v44 = vpop.permute.xlu1 %2267 }
0x18e7   :  { %v2270_v63 = vadd.f32 %v3427_v37, %v2268_v44 }
0x18e9   :  { %v2271_v1 = vsub.f32 %v2270_v63, %v4025_v59 }
0x18eb   :  { %v2272_v20 = vmul.f32 %v2271_v1, %v4030_v12 }
0x18ed   :  { %v2273_v62 = vadd.f32 %v2272_v20, %v4025_v59 }
0x18ef   :  { %2458 = vrot.lane.b32.xlu0 %v2273_v62, %s3467_s28 }
0x1945   :  { %v2371_v45 = vpop.permute.xlu1 %2370 }
0x1946   :  { %v2373_v46 = vadd.f32 %v3429_v39, %v2371_v45 }
0x1948   :  { %v2374_v49 = vsub.f32 %v2373_v46, %v4034_v51 }
0x194a   :  { %v2380_v53 = vmul.f32 %v2378_v50, %v2374_v49 }
0x194c   :  { %v2381_v57 = vadd.f32 %v2380_v53, %v4034_v51 }
0x194e   :  { %2383 = vrot.lane.b32.xlu1 %v2381_v57, %s3467_s28 }
0x1961   :  { %v2459_v58 = vpop.permute.xlu0 %2458 }
0x1962   :  { %3163 = vmatmul.mubr.msk.f32.vlgmr.msra.gmra.mrb[24].mxu1 %vm218_vm2, %v2459_v58 }
0x19c0   :  { %v2384_v2 = vpop.permute.xlu1 %2383 }
0x19c1   :  { %3152 = vmatmul.mubr.msk.f32.vlgmr.msra.gmra.mrb[28].mxu0 %vm218_vm2, %v2384_v2 }
0x19c2   :  { %3173 = vmatprep.mubr.msk.f32.mxu0 %vm3465_vm1, %v3466_v10  ;;  %3326 = vmatpush3.bf16.msra.mxu0 %v3325_v41 }
0x19c3   :  { %3327 = vmatprep.subr.bf16.mxu0 %v3464_v3 }
0x19c6   :  { %3329 = vmatpush3.bf16.msra.mxu0 %v3328_v24 }
0x1a35   :  { %v2528_v4 = vpop.f32.mrb[24].mxu1 }
0x1a36   :  { %v2539_v56 = vadd.f32 %v2528_v4, %v3706_v5  ;;  %v3164_v59 = vpop.f32.mrb[25].mxu1 }
0x1a38   :  { %2541 = vrot.lane.b32.xlu0 %v2539_v56, %s3467_s28 }
0x1a94   :  { %v2453_v55 = vpop.f32.mrb[28].mxu0 }
0x1a95   :  { %v2454_v54 = vadd.f32 %v3439_v6, %v2453_v55  ;;  %v3153_v12 = vpop.f32.mrb[29].mxu0 }
0x1a97   :  { %v2532_v8 = vadd.f32 %v2528_v4, %v2454_v54 }
0x1a99   :  { %v2745_v51 = vmul.f32 -1.442695, %v2532_v8 }
0x1a9b   :  { %3430 = vpow2.f32 %v2745_v51 }
0x1aa5   :  { %v3431_v15 = vpop.eup %3430 }
0x1aa6   :  { %v2536_v17 = vadd.f32 1.0, %v3431_v15 }
0x1aa8   :  { %3432 = vrcp.f32 %v2536_v17 }
0x1aaa   :  { %v2542_v7 = vpop.permute.xlu0 %2541 }
0x1ab2   :  { %v3433_v10 = vpop.eup %3432 }
0x1ab3   :  { %v2544_v48 = vmul.f32 %v3433_v10, %v2542_v7 }
0x1ab5   :  { %2546 = vrot.lane.b32.xlu1 %v2544_v48, %s3467_s28 }
0x1b27   :  { %v2547_v5 = vpop.permute.xlu1 %2546 }
0x1b28   :  { %v2549_v52 = vadd.f32 %v2547_v5, %v2454_v54 }
0x1b2a   :  { %3434 = vtanh.f32 %v2549_v52 }
0x1b34   :  { %v3435_v13 = vpop.eup %3434 }
0x1b35   :  { %v2551_v11 = vsub.f32 %v2273_v62, %v3435_v13 }
0x1b37   :  { %2553 = vrot.lane.b32.xlu0 %v2551_v11, %s3469_s17 }
0x1ba9   :  { %v2554_v23 = vpop.permute.xlu0 %2553 }
0x1baa   :  { %v2556_v47 = vmul.f32 %v3433_v10, %v2554_v23 }
0x1bac   :  { %2558 = vrot.lane.b32.xlu1 %v2556_v47, %s3470_s6 }
0x1c1e   :  { %v2559_v25 = vpop.permute.xlu1 %2558 }
0x1c1f   :  { %v2561_v26 = vadd.f32 %v3435_v13, %v2559_v25 }
0x1c21   :  { %v2562_v27 = vsub.f32 %v2561_v26, %v2273_v62 }
0x1c23   :  { %v2563_v9 = vmul.f32 %v2562_v27, %v2378_v50 }
0x1c25   :  { %v2564_v28 = vadd.f32 %v2563_v9, %v2273_v62 }
0x1c27   :  { %2577 = vrot.lane.b32.xlu0 %v2564_v28, %s3467_s28 }
0x1c99   :  { %v2578_v29 = vpop.permute.xlu0 %2577 }
0x1c9a   :  { %3174 = vmatmul.mubr.msk.f32.vlgmr.msra.gmra.mrb[30].mxu0 %vm218_vm2, %v2578_v29 }
0x1d6d   :  { %v2647_v31 = vpop.f32.mrb[30].mxu0 }
0x1d6e   :  { %v2648_v16 = vadd.f32 %v2746_v30, %v2647_v31  ;;  %v3175_v3 = vpop.f32.mrb[31].mxu0 }
0x1d70   :  { %v2651_v32 = vsel %vm218_vm2, %v2648_v16, 0.0 }
0x1d71   :  { %2652 = vadd.xlane.f32.xlu1 %v2651_v32 }
0x1dfe   :  { %v2653_v33 = vpop.xlane.xlu1 %2652 }
0x1dff   :  { %v2655_v34 = vmul.f32 0.03125, %v2653_v33 }
0x1e01   :  { %v2656_v36 = vsub.f32 %v2648_v16, %v2655_v34 }
0x1e03   :  { %v2657_v37 = vmul.f32 %v2656_v36, %v2656_v36 }
0x1e05   :  { %v2658_v38 = vsel %vm218_vm2, %v2657_v37, 0.0 }
0x1e06   :  { %2659 = vadd.xlane.f32.xlu0 %v2658_v38 }
0x1e93   :  { %v2660_v0 = vpop.xlane.xlu0 %2659 }
0x1e94   :  { %v2661_v35 = vmul.f32 0.03125, %v2660_v0 }
0x1e96   :  { %v2662_v39 = vadd.f32 1e-05, %v2661_v35 }
0x1e98   :  { %3436 = vrsqrt.f32 %v2662_v39 }
0x1ea2   :  { %v3437_v40 = vpop.eup %3436 }
0x1ea3   :  { %v2664_v61 = vmul.f32 %v3437_v40, %v2656_v36 }
0x1ea5   :  { %v2672_v43 = vmul.f32 %v2748_v14, %v2664_v61 }
0x1ea7   :  { %v2680_v60 = vadd.f32 %v2749_v42, %v2672_v43 }
0x1ea9   :  { %2681 = vst.msk [vmem:[#allocation2] sm:$0xff] %vm218_vm2, %v2680_v60 }
0x1eaa   :  { %3451 = shalt.err (!%p3448_p4)
}
0x1eab   :  { %s3452_s21 = scalar_lea.hbm %s4148_s14, 128 }
0x1eac   :  { %p3453_p5 = scmp.ne.s32.totalorder %s4148_s14, %s3452_s21  ;;  %p3456_p6 = scmp.lt.u32.totalorder %s3452_s21, %s4148_s14 }
0x1eae   :  { %p3458_p7 = pnand %p3456_p6, %p3453_p5 }
0x1eb0   :  { %3461 = shalt.err (!%p3458_p7)
}
0x1eb1   :  { %2691 = dma.vmem_to_hbm [thread:$0]  %s2689_s18, 128, %s4148_s14, [#allocation3]  }
0x1eb2   :  { %3462 = dma.done.wait [#allocation3], 128  }
0x1eb3   :  { %3463 = vsyncadd [#allocation3], 4294967168 }
0x1eb4   :  { %2695 = vsyncpa [#allocation3], 1 }

</bundles_post_ra>
